<compile_context>
chip_gen: v6e
topology: v6e:2x2x1
jax: 0.10.0
libtpu: 0.0.40
codegen_flags: <defaults>
</compile_context>

<pallas_src>
import functools

import jax
import jax.numpy as jnp
from jax.experimental import pallas as pl
from jax.experimental.pallas import tpu as pltpu


def _discriminator_kernel(zt_ref, w1t_ref, b1_ref, w2t_ref, b2_ref, w3_ref,
                          b3_ref, o_ref):
    # zt_ref:  (z_dim, TB)  bf16   (batch on the lane axis)
    # w1t_ref: (H, z_dim)   bf16
    # b1_ref:  (H, 1)       f32
    # w2t_ref: (H, H)       bf16
    # b2_ref:  (H, 1)       f32
    # w3_ref:  (H, 1)       f32
    # b3_ref:  (1, 1)       f32, SMEM scalar
    # o_ref:   (1, TB)      f32, lane-dense output row

    # Layer 1: (H, z_dim) @ (z_dim, TB) -> (H, TB); bf16 MXU, f32 accumulate.
    h1 = jnp.dot(w1t_ref[...], zt_ref[...], preferred_element_type=jnp.float32)
    h1 = jnp.maximum(h1 + b1_ref[...], 0.0)  # bias + ReLU in f32 (VPU)

    # Layer 2: (H, H) @ (H, TB) -> (H, TB); bf16 MXU, f32 accumulate.
    h2 = jnp.dot(w2t_ref[...], h1.astype(jnp.bfloat16),
                 preferred_element_type=jnp.float32)
    h2 = jnp.maximum(h2 + b2_ref[...], 0.0)

    # Layer 3 (N=1): keep it off the MXU -- VPU multiply by the w3 column plus a
    # sublane reduction yields a lane-dense (1, TB) logit row directly.
    logit = jnp.sum(h2 * w3_ref[...], axis=0, keepdims=True) + b3_ref[0, 0]
    o_ref[...] = jax.nn.sigmoid(logit).astype(o_ref.dtype)


@functools.partial(jax.jit, static_argnames=("block_b",))
def discriminator_forward(z, w1t, b1c, w2t, b2c, w3c, b3c, *, block_b=512):
    """Pallas-backed forward of Discriminator_forMNIST.

    z:   (B, z_dim) float32
    w1t: (hidden, z_dim) bf16 (transposed W1)
    b1c: (hidden, 1) f32
    w2t: (hidden, hidden) bf16 (transposed W2)
    b2c: (hidden, 1) f32
    w3c: (hidden, 1) f32
    b3c: (1, 1) f32
    returns: (B, 1) float32 in (0, 1)
    """
    B, z_dim = z.shape
    hidden = w1t.shape[0]

    # Batch lives on the lane axis: the tile must be a multiple of 128.
    block_b = max(128, (block_b // 128) * 128)
    bp0 = ((B + 127) // 128) * 128
    tb = min(block_b, bp0)
    # Keep >= 2 "parallel" grid steps when the batch allows (v7x megacore).
    if bp0 // tb < 2 and bp0 >= 256:
        tb = max(128, ((bp0 // 2) // 128) * 128)
    bp = ((B + tb - 1) // tb) * tb

    # Tiny host-side prep: transpose + cast z (B x z_dim is a few KB/row-bytes).
    zt = jnp.transpose(z).astype(jnp.bfloat16)  # (z_dim, B)
    if bp != B:
        zt = jnp.pad(zt, ((0, 0), (0, bp - B)))

    grid = (bp // tb,)

    out = pl.pallas_call(
        _discriminator_kernel,
        out_shape=jax.ShapeDtypeStruct((1, bp), jnp.float32),
        grid_spec=pltpu.PrefetchScalarGridSpec(
            num_scalar_prefetch=0,
            grid=grid,
            in_specs=[
                pl.BlockSpec((z_dim, tb), lambda i: (0, i)),        # z^T tile
                pl.BlockSpec((hidden, z_dim), lambda i: (0, 0)),    # W1^T (resident)
                pl.BlockSpec((hidden, 1), lambda i: (0, 0)),        # b1
                pl.BlockSpec((hidden, hidden), lambda i: (0, 0)),   # W2^T (resident)
                pl.BlockSpec((hidden, 1), lambda i: (0, 0)),        # b2
                pl.BlockSpec((hidden, 1), lambda i: (0, 0)),        # w3 column
                pl.BlockSpec(memory_space=pltpu.MemorySpace.SMEM),  # b3 scalar
            ],
            out_specs=pl.BlockSpec((1, tb), lambda i: (0, i)),      # lane-dense
        ),
        compiler_params=pltpu.CompilerParams(
            dimension_semantics=("parallel",),
        ),
    )(zt, w1t, b1c, w2t, b2c, w3c, b3c)

    return out[0, :B].reshape(B, 1)


class DiscriminatorForMNIST:
    """JAX/Pallas analogue of the PyTorch Discriminator_forMNIST module."""

    def __init__(self, z_dim=10, hidden=512, key=None):
        self.z_dim = z_dim
        self.hidden = hidden
        if key is None:
            key = jax.random.PRNGKey(0)
        k1, k2, k3 = jax.random.split(key, 3)

        def kaiming(k, fan_in, fan_out):
            # kaiming_normal_: std = sqrt(2 / fan_in); stored as (in, out)
            std = jnp.sqrt(2.0 / fan_in)
            return jax.random.normal(k, (fan_in, fan_out), dtype=jnp.float32) * std

        # f32 "master" parameters (PyTorch-equivalent semantics / reference path).
        self.w1 = kaiming(k1, z_dim, hidden)
        self.b1 = jnp.zeros((hidden,), dtype=jnp.float32)
        self.w2 = kaiming(k2, hidden, hidden)
        self.b2 = jnp.zeros((hidden,), dtype=jnp.float32)
        self.w3 = kaiming(k3, hidden, 1)
        self.b3 = jnp.zeros((1,), dtype=jnp.float32)

        # Pre-transposed / pre-cast copies consumed by the Pallas kernel.
        self.w1t = jnp.transpose(self.w1).astype(jnp.bfloat16)   # (hidden, z_dim)
        self.w2t = jnp.transpose(self.w2).astype(jnp.bfloat16)   # (hidden, hidden)
        self.b1c = self.b1.reshape(hidden, 1)
        self.b2c = self.b2.reshape(hidden, 1)
        self.w3c = self.w3.reshape(hidden, 1)
        self.b3c = self.b3.reshape(1, 1)

    def __call__(self, z):
        return discriminator_forward(z, self.w1t, self.b1c, self.w2t, self.b2c,
                                     self.w3c, self.b3c)


def _reference_forward(z, w1, b1, w2, b2, w3, b3):
    h1 = jnp.maximum(z @ w1 + b1, 0.0)
    h2 = jnp.maximum(h1 @ w2 + b2, 0.0)
    return jax.nn.sigmoid(h2 @ w3 + b3)


if __name__ == "__main__":
    key = jax.random.PRNGKey(0)
    k_param, k_z = jax.random.split(key)

    z_dim = 10
    batch = 8  # small example batch

    model = DiscriminatorForMNIST(z_dim=z_dim, key=k_param)
    z = jax.random.normal(k_z, (batch, z_dim), dtype=jnp.float32)

    y = model(z)
    y = jax.block_until_ready(y)

    # Correctness check against a pure-f32 JAX reference of the same MLP.
    # Tolerance loosened vs. the previous version because the MXU path now runs
    # on bf16 inputs (f32 accumulation).
    y_ref = _reference_forward(z, model.w1, model.b1, model.w2, model.b2,
                               model.w3, model.b3)
    assert y.shape == (batch, 1), y.shape
    assert y.dtype == jnp.float32
    assert bool(jnp.all(jnp.isfinite(y)))
    assert bool(jnp.all((y > 0.0) & (y < 1.0)))
    assert jnp.allclose(y, y_ref, atol=2e-2, rtol=2e-2), float(
        jnp.max(jnp.abs(y - y_ref)))

    print("KERNEL_OK")
</pallas_src>

<mosaic_0001>
module attributes {stable_mosaic.version = 11 : i64} {
  func.func @_discriminator_kernel(%arg0: i32, %arg1: memref<10x128xbf16, #tpu.memory_space<vmem>>, %arg2: memref<512x10xbf16, #tpu.memory_space<vmem>>, %arg3: memref<512x1xf32, #tpu.memory_space<vmem>>, %arg4: memref<512x512xbf16, #tpu.memory_space<vmem>>, %arg5: memref<512x1xf32, #tpu.memory_space<vmem>>, %arg6: memref<512x1xf32, #tpu.memory_space<vmem>>, %arg7: memref<1x1xf32, #tpu.memory_space<smem>>, %arg8: memref<1x128xf32, #tpu.memory_space<vmem>>) attributes {dimension_semantics = [#tpu.dimension_semantics<parallel>], iteration_bounds = array<i64: 1>, scalar_prefetch = 0 : i64, scratch_operands = 0 : i64, tpu.core_type = #tpu.core_type<tc>, window_params = [{transform_indices = @transform_0, window_bounds = array<i64: 10, 128>}, {pipeline_mode = #tpu.pipeline_mode<synchronous>, transform_indices = @transform_1, window_bounds = array<i64: 512, 10>}, {pipeline_mode = #tpu.pipeline_mode<synchronous>, transform_indices = @transform_2, window_bounds = array<i64: 512, 1>}, {pipeline_mode = #tpu.pipeline_mode<synchronous>, transform_indices = @transform_3, window_bounds = array<i64: 512, 512>}, {pipeline_mode = #tpu.pipeline_mode<synchronous>, transform_indices = @transform_4, window_bounds = array<i64: 512, 1>}, {pipeline_mode = #tpu.pipeline_mode<synchronous>, transform_indices = @transform_5, window_bounds = array<i64: 512, 1>}, {transform_indices = @transform_6, window_bounds = array<i64: 1, 1>}, {transform_indices = @transform_7, window_bounds = array<i64: 1, 128>}]} {
    %c0 = arith.constant 0 : index
    %c0_0 = arith.constant 0 : index
    %0 = vector.load %arg2[%c0, %c0_0] : memref<512x10xbf16, #tpu.memory_space<vmem>>, vector<512x10xbf16>
    %c0_1 = arith.constant 0 : index
    %c0_2 = arith.constant 0 : index
    %1 = vector.load %arg1[%c0_1, %c0_2] : memref<10x128xbf16, #tpu.memory_space<vmem>>, vector<10x128xbf16>
    %cst = arith.constant dense<0.000000e+00> : vector<512x128xf32>
    %2 = tpu.matmul %0, %1, %cst {dimension_numbers = #tpu.dot_dimension_numbers<[1], [0], [0], [1], [0, 0, 1, 1], [], []>} : vector<512x10xbf16>, vector<10x128xbf16>, vector<512x128xf32> -> vector<512x128xf32>
    %c0_3 = arith.constant 0 : index
    %c0_4 = arith.constant 0 : index
    %3 = vector.load %arg3[%c0_3, %c0_4] : memref<512x1xf32, #tpu.memory_space<vmem>>, vector<512x1xf32>
    %4 = vector.broadcast %3 : vector<512x1xf32> to vector<512x128xf32>
    %5 = arith.addf %2, %4 : vector<512x128xf32>
    %cst_5 = arith.constant 0.000000e+00 : f32
    %6 = vector.broadcast %cst_5 : f32 to vector<512x128xf32>
    %7 = arith.maximumf %5, %6 : vector<512x128xf32>
    %c0_6 = arith.constant 0 : index
    %c0_7 = arith.constant 0 : index
    %8 = vector.load %arg4[%c0_6, %c0_7] : memref<512x512xbf16, #tpu.memory_space<vmem>>, vector<512x512xbf16>
    %9 = arith.truncf %7 : vector<512x128xf32> to vector<512x128xbf16>
    %cst_8 = arith.constant dense<0.000000e+00> : vector<512x128xf32>
    %10 = tpu.matmul %8, %9, %cst_8 {dimension_numbers = #tpu.dot_dimension_numbers<[1], [0], [0], [1], [0, 0, 1, 1], [], []>} : vector<512x512xbf16>, vector<512x128xbf16>, vector<512x128xf32> -> vector<512x128xf32>
    %c0_9 = arith.constant 0 : index
    %c0_10 = arith.constant 0 : index
    %11 = vector.load %arg5[%c0_9, %c0_10] : memref<512x1xf32, #tpu.memory_space<vmem>>, vector<512x1xf32>
    %12 = vector.broadcast %11 : vector<512x1xf32> to vector<512x128xf32>
    %13 = arith.addf %10, %12 : vector<512x128xf32>
    %cst_11 = arith.constant 0.000000e+00 : f32
    %14 = vector.broadcast %cst_11 : f32 to vector<512x128xf32>
    %15 = arith.maximumf %13, %14 : vector<512x128xf32>
    %c0_12 = arith.constant 0 : index
    %c0_13 = arith.constant 0 : index
    %16 = vector.load %arg6[%c0_12, %c0_13] : memref<512x1xf32, #tpu.memory_space<vmem>>, vector<512x1xf32>
    %17 = vector.broadcast %16 : vector<512x1xf32> to vector<512x128xf32>
    %18 = arith.mulf %15, %17 : vector<512x128xf32>
    %cst_14 = arith.constant dense<0.000000e+00> : vector<128xf32>
    %19 = vector.multi_reduction <add>, %18, %cst_14 [0] : vector<512x128xf32> to vector<128xf32>
    %20 = vector.shape_cast %19 : vector<128xf32> to vector<1x128xf32>
    %c0_15 = arith.constant 0 : index
    %c0_16 = arith.constant 0 : index
    %21 = memref.load %arg7[%c0_15, %c0_16] : memref<1x1xf32, #tpu.memory_space<smem>>
    %22 = vector.broadcast %21 : f32 to vector<1x128xf32>
    %23 = arith.addf %20, %22 : vector<1x128xf32>
    %24 = arith.negf %23 : vector<1x128xf32>
    %25 = math.exp %24 : vector<1x128xf32>
    %cst_17 = arith.constant 1.000000e+00 : f32
    %26 = vector.broadcast %cst_17 : f32 to vector<1x128xf32>
    %27 = arith.addf %26, %25 : vector<1x128xf32>
    %28 = arith.divf %26, %27 : vector<1x128xf32>
    %c0_18 = arith.constant 0 : index
    %c0_19 = arith.constant 0 : index
    %29 = vector.load %arg8[%c0_18, %c0_19] : memref<1x128xf32, #tpu.memory_space<vmem>>, vector<1x128xf32>
    tpu.vector_store %arg8[%c0_18, %c0_19], %28 {strides = array<i32>} : memref<1x128xf32, #tpu.memory_space<vmem>>, vector<1x128xf32>,
    return
  }
  func.func @transform_0(%arg0: i32) -> (i32, i32) {
    %c0_i32 = arith.constant 0 : i32
    %c0_i32_0 = arith.constant 0 : i32
    return %c0_i32, %arg0 : i32, i32
  }
  func.func @transform_1(%arg0: i32) -> (i32, i32) {
    %c0_i32 = arith.constant 0 : i32
    %c0_i32_0 = arith.constant 0 : i32
    %c0_i32_1 = arith.constant 0 : i32
    return %c0_i32, %c0_i32_0 : i32, i32
  }
  func.func @transform_2(%arg0: i32) -> (i32, i32) {
    %c0_i32 = arith.constant 0 : i32
    %c0_i32_0 = arith.constant 0 : i32
    %c0_i32_1 = arith.constant 0 : i32
    return %c0_i32, %c0_i32_0 : i32, i32
  }
  func.func @transform_3(%arg0: i32) -> (i32, i32) {
    %c0_i32 = arith.constant 0 : i32
    %c0_i32_0 = arith.constant 0 : i32
    %c0_i32_1 = arith.constant 0 : i32
    return %c0_i32, %c0_i32_0 : i32, i32
  }
  func.func @transform_4(%arg0: i32) -> (i32, i32) {
    %c0_i32 = arith.constant 0 : i32
    %c0_i32_0 = arith.constant 0 : i32
    %c0_i32_1 = arith.constant 0 : i32
    return %c0_i32, %c0_i32_0 : i32, i32
  }
  func.func @transform_5(%arg0: i32) -> (i32, i32) {
    %c0_i32 = arith.constant 0 : i32
    %c0_i32_0 = arith.constant 0 : i32
    %c0_i32_1 = arith.constant 0 : i32
    return %c0_i32, %c0_i32_0 : i32, i32
  }
  func.func @transform_6(%arg0: i32) -> (i32, i32) {
    %c0_i32 = arith.constant 0 : i32
    %c0_i32_0 = arith.constant 0 : i32
    %c0_i32_1 = arith.constant 0 : i32
    return %c0_i32, %c0_i32_0 : i32, i32
  }
  func.func @transform_7(%arg0: i32) -> (i32, i32) {
    %c0_i32 = arith.constant 0 : i32
    %c0_i32_0 = arith.constant 0 : i32
    return %c0_i32, %arg0 : i32, i32
  }
}

</mosaic_0001>

<bundles_post_ra>
// kernel: discriminator_forward.1
= control target key start
LH: loop header
LB: loop body
LE: loop exit
PB: predicated region body
PF: predicated region fallthrough
CT: control target
= control target key end

     0   :  { %v5763_v0 = vmov 0   ;;  %vm740_vm0 = vcmask 1044480   ;;  %vm643_vm1 = vcmask 80896   ;;  %s5755_s2 = inlined_call_operand.vmem [shape: f32[512,1], index: 2, kind: input, shape index: {}]   ;;  %s5756_s0 = inlined_call_operand.vmem [shape: bf16[10,128], index: 0, kind: input, shape index: {}]   ;;  %s5757_s1 = inlined_call_operand.vmem [shape: bf16[512,10], index: 1, kind: input, shape index: {}]   ;;  %s5758_s4 = inlined_call_operand.vmem [shape: f32[512,1], index: 4, kind: input, shape index: {}]   ;;  %s5759_s3 = inlined_call_operand.vmem [shape: bf16[512,512], index: 3, kind: input, shape index: {}]   ;;  %s5760_s5 = inlined_call_operand.vmem [shape: f32[512,1], index: 5, kind: input, shape index: {}]   ;;  %s5761_s6 = inlined_call_operand.<no memory space> [shape: f32[1,1], index: 6, kind: input, shape index: {}]   ;;  %s5762_s7 = inlined_call_operand.vmem [shape: f32[1,128], index: 7, kind: output, shape index: {}]  }
   0x1   :  { %3753 = vset.pattern.permute.xlu1 %v5763_v0  ;;  %3752 = vset.pattern.permute.xlu0 %v5763_v0  ;;  %v96_v1 = vld [vmem:[%s5755_s2 + $0x10] sm:$0xff]  ;;  %v94_v2 = vld [vmem:[%s5755_s2] sm:$0xff]  ;;  %v97_v4 = vld [vmem:[%s5755_s2 + $0x18] sm:$0xff] }
   0x2   :  { %170 = vperm.xlu1 %3753, %v96_v1   ;;  %160 = vperm.xlu0 %3752, %v94_v2   ;;  %v3754_v3 = vld [vmem:[%s5756_s0] sm:$0x1f]   ;;  %v95_v5 = vld [vmem:[%s5755_s2 + $0x8] sm:$0xff]  ;;  %v101_v13 = vld [vmem:[%s5755_s2 + $0x38] sm:$0xff] }
   0x3   :  { %3749 = vmatprep.subr.msk.bf16.mxu0 %vm740_vm0, %v3754_v3  ;;  %3750 = vmatprep.subr.msk.bf16.mxu1 %vm740_vm0, %v3754_v3  ;;  %v742_v6 = vsel %vm740_vm0, %v3754_v3, 0  ;;  %v3755_v7 = vld [vmem:[%s5757_s1] sm:$0xff]   ;;  %v3757_v9 = vld [vmem:[%s5757_s1 + $0x8] sm:$0xff]   ;;  %v3759_v14 = vld [vmem:[%s5757_s1 + $0x10] sm:$0xff]  }
   0x4   :  { %3682 = vmatpush3.bf16.msra.mxu0 %v742_v6  ;;  %3748 = vmatpush3.bf16.msra.mxu1 %v742_v6  ;;  %v3756_v8 = vld [vmem:[%s5757_s1 + $0x80] sm:$0xff]   ;;  %v3758_v10 = vld [vmem:[%s5757_s1 + $0x88] sm:$0xff]   ;;  %v3760_v15 = vld [vmem:[%s5757_s1 + $0x90] sm:$0xff]  }
   0x5   :  { %3683 = vmatprep.mubr.msk.bf16.mxu0 %vm643_vm1, %v3755_v7  ;;  %3715 = vmatprep.mubr.msk.bf16.mxu1 %vm643_vm1, %v3756_v8  ;;  %v99_v11 = vld [vmem:[%s5755_s2 + $0x28] sm:$0xff]  ;;  %v98_v12 = vld [vmem:[%s5755_s2 + $0x20] sm:$0xff]  ;;  %v100_v16 = vld [vmem:[%s5755_s2 + $0x30] sm:$0xff] }
   0x6   :  { %175 = vperm.xlu1 %3753, %v97_v4   ;;  %165 = vperm.xlu0 %3752, %v95_v5   ;;  %v3761_v17 = vld [vmem:[%s5757_s1 + $0x18] sm:$0xff]   ;;  %v103_v19 = vld [vmem:[%s5755_s2 + $0x48] sm:$0xff]  ;;  %v102_v20 = vld [vmem:[%s5755_s2 + $0x40] sm:$0xff] }
   0x7   :  { %3684 = vmatmul.mubr.msk.bf16.vlgmr.msra.gmra.mxu0 %vm643_vm1, %v3757_v9  ;;  %2281 = vmatprep.subr.bf16.mxu1 %v5763_v0  ;;  %v3762_v18 = vld [vmem:[%s5757_s1 + $0x98] sm:$0xff]   ;;  %v3763_v21 = vld [vmem:[%s5757_s1 + $0x20] sm:$0xff]   ;;  %v104_v24 = vld [vmem:[%s5755_s2 + $0x50] sm:$0xff] }
   0x8   :  { %3716 = vmatmul.mubr.msk.bf16.vlgmr.msra.gmra.mxu1 %vm643_vm1, %v3758_v10  ;;  %2570 = vmatprep.subr.bf16.mxu0 %v5763_v0  ;;  %v3764_v22 = vld [vmem:[%s5757_s1 + $0xa0] sm:$0xff]   ;;  %v105_v23 = vld [vmem:[%s5755_s2 + $0x58] sm:$0xff]  ;;  %v3765_v25 = vld [vmem:[%s5757_s1 + $0x28] sm:$0xff]  }
   0x9   :  { %3687 = vmatprep.mubr.msk.bf16.mxu0 %vm643_vm1, %v3759_v14  ;;  %3719 = vmatprep.mubr.msk.bf16.mxu1 %vm643_vm1, %v3760_v15  ;;  %v3766_v26 = vld [vmem:[%s5757_s1 + $0xa8] sm:$0xff]   ;;  %v3767_v27 = vld [vmem:[%s5757_s1 + $0x30] sm:$0xff]   ;;  %v106_v29 = vld [vmem:[%s5755_s2 + $0x60] sm:$0xff] }
   0xa   :  { %185 = vperm.xlu1 %3753, %v99_v11   ;;  %180 = vperm.xlu0 %3752, %v98_v12   ;;  %v107_v28 = vld [vmem:[%s5755_s2 + $0x68] sm:$0xff]  ;;  %v3768_v30 = vld [vmem:[%s5757_s1 + $0xb0] sm:$0xff]   ;;  %v109_v31 = vld [vmem:[%s5755_s2 + $0x78] sm:$0xff] }
   0xb   :  { %v108_v32 = vld [vmem:[%s5755_s2 + $0x70] sm:$0xff]  ;;  %v3769_v33 = vld [vmem:[%s5757_s1 + $0x38] sm:$0xff]   ;;  %v111_v35 = vld [vmem:[%s5755_s2 + $0x88] sm:$0xff] }
   0xc   :  { %v3770_v34 = vld [vmem:[%s5757_s1 + $0xb8] sm:$0xff]   ;;  %v3771_v36 = vld [vmem:[%s5757_s1 + $0x40] sm:$0xff]   ;;  %v112_v40 = vld [vmem:[%s5755_s2 + $0x90] sm:$0xff] }
   0xd   :  { %v110_v37 = vld [vmem:[%s5755_s2 + $0x80] sm:$0xff]  ;;  %v113_v39 = vld [vmem:[%s5755_s2 + $0x98] sm:$0xff]  ;;  %v3773_v41 = vld [vmem:[%s5757_s1 + $0x48] sm:$0xff]  }
   0xe   :  { %195 = vperm.xlu1 %3753, %v101_v13   ;;  %190 = vperm.xlu0 %3752, %v100_v16   ;;  %v3772_v38 = vld [vmem:[%s5757_s1 + $0xc0] sm:$0xff]   ;;  %v3774_v42 = vld [vmem:[%s5757_s1 + $0xc8] sm:$0xff]   ;;  %v3775_v43 = vld [vmem:[%s5757_s1 + $0x50] sm:$0xff]  }
   0xf   :  { %3688 = vmatmul.mubr.msk.bf16.gmra.mxu0 %vm643_vm1, %v3761_v17  ;;  %v115_v44 = vld [vmem:[%s5755_s2 + $0xa8] sm:$0xff]  ;;  %v114_v45 = vld [vmem:[%s5755_s2 + $0xa0] sm:$0xff]  ;;  %v3776_v46 = vld [vmem:[%s5757_s1 + $0xd0] sm:$0xff]  }
  0x10   :  { %3720 = vmatmul.mubr.msk.bf16.gmra.mxu1 %vm643_vm1, %v3762_v18  ;;  %3691 = vmatprep.mubr.msk.bf16.mxu0 %vm643_vm1, %v3763_v21  ;;  %v117_v47 = vld [vmem:[%s5755_s2 + $0xb8] sm:$0xff]  ;;  %v116_v48 = vld [vmem:[%s5755_s2 + $0xb0] sm:$0xff]  ;;  %v3779_v51 = vld [vmem:[%s5757_s1 + $0x60] sm:$0xff]  }
  0x11   :  { %3723 = vmatprep.mubr.msk.bf16.mxu1 %vm643_vm1, %v3764_v22  ;;  %v3777_v49 = vld [vmem:[%s5757_s1 + $0x58] sm:$0xff]   ;;  %v119_v52 = vld [vmem:[%s5755_s2 + $0xc8] sm:$0xff]  ;;  %v118_v53 = vld [vmem:[%s5755_s2 + $0xc0] sm:$0xff] }
  0x12   :  { %205 = vperm.xlu1 %3753, %v103_v19   ;;  %200 = vperm.xlu0 %3752, %v102_v20   ;;  %v3778_v50 = vld [vmem:[%s5757_s1 + $0xd8] sm:$0xff]   ;;  %v3780_v54 = vld [vmem:[%s5757_s1 + $0xe0] sm:$0xff]   ;;  %v120_v56 = vld [vmem:[%s5755_s2 + $0xd0] sm:$0xff] }
  0x13   :  { %v121_v55 = vld [vmem:[%s5755_s2 + $0xd8] sm:$0xff]  ;;  %v3781_v57 = vld [vmem:[%s5757_s1 + $0x68] sm:$0xff]   ;;  %v3783_v59 = vld [vmem:[%s5757_s1 + $0x70] sm:$0xff]  }
  0x14   :  { %v3782_v58 = vld [vmem:[%s5757_s1 + $0xe8] sm:$0xff]   ;;  %v122_v61 = vld [vmem:[%s5755_s2 + $0xe0] sm:$0xff]  ;;  %v3784_v62 = vld [vmem:[%s5757_s1 + $0xf0] sm:$0xff]  }
  0x15   :  { %v123_v60 = vld [vmem:[%s5755_s2 + $0xe8] sm:$0xff]  ;;  %v125_v63 = vld [vmem:[%s5755_s2 + $0xf8] sm:$0xff]  ;;  %v124_v1 = vld [vmem:[%s5755_s2 + $0xf0] sm:$0xff] }
  0x16   :  { %215 = vperm.xlu1 %3753, %v105_v23   ;;  %210 = vperm.xlu0 %3752, %v104_v24   ;;  %v3785_v2 = vld [vmem:[%s5757_s1 + $0x78] sm:$0xff]   ;;  %v127_v4 = vld [vmem:[%s5755_s2 + $0x108] sm:$0xff]  ;;  %v126_v5 = vld [vmem:[%s5755_s2 + $0x100] sm:$0xff] }
  0x17   :  { %3692 = vmatmul.mubr.msk.bf16.gmra.mxu0 %vm643_vm1, %v3765_v25  ;;  %v3786_v3 = vld [vmem:[%s5757_s1 + $0xf8] sm:$0xff]   ;;  %v140_v6 = vld [vmem:[%s5755_s2 + $0x170] sm:$0xff]  ;;  %v138_v8 = vld [vmem:[%s5755_s2 + $0x160] sm:$0xff] }
  0x18   :  { %3724 = vmatmul.mubr.msk.bf16.gmra.mxu1 %vm643_vm1, %v3766_v26  ;;  %3695 = vmatprep.mubr.msk.bf16.mxu0 %vm643_vm1, %v3767_v27  ;;  %v128_v7 = vld [vmem:[%s5755_s2 + $0x110] sm:$0xff]  ;;  %v141_v9 = vld [vmem:[%s5755_s2 + $0x178] sm:$0xff]  ;;  %v139_v11 = vld [vmem:[%s5755_s2 + $0x168] sm:$0xff] }
  0x19   :  { %3727 = vmatprep.mubr.msk.bf16.mxu1 %vm643_vm1, %v3768_v30  ;;  %v136_v10 = vld [vmem:[%s5755_s2 + $0x150] sm:$0xff]  ;;  %v134_v12 = vld [vmem:[%s5755_s2 + $0x140] sm:$0xff]  ;;  %v137_v13 = vld [vmem:[%s5755_s2 + $0x158] sm:$0xff] }
  0x1a   :  { %225 = vperm.xlu1 %3753, %v107_v28   ;;  %220 = vperm.xlu0 %3752, %v106_v29   ;;  %v132_v14 = vld [vmem:[%s5755_s2 + $0x130] sm:$0xff]  ;;  %v135_v15 = vld [vmem:[%s5755_s2 + $0x148] sm:$0xff]  ;;  %v130_v16 = vld [vmem:[%s5755_s2 + $0x120] sm:$0xff] }
  0x1b   :  { %v133_v17 = vld [vmem:[%s5755_s2 + $0x138] sm:$0xff]  ;;  %v131_v19 = vld [vmem:[%s5755_s2 + $0x128] sm:$0xff]  ;;  %v156_v21 = vld [vmem:[%s5755_s2 + $0x1f0] sm:$0xff] }
  0x1c   :  { %v129_v18 = vld [vmem:[%s5755_s2 + $0x118] sm:$0xff]  ;;  %v155_v22 = vld [vmem:[%s5755_s2 + $0x1e8] sm:$0xff]  ;;  %v154_v23 = vld [vmem:[%s5755_s2 + $0x1e0] sm:$0xff] }
  0x1d   :  { %v157_v20 = vld [vmem:[%s5755_s2 + $0x1f8] sm:$0xff]  ;;  %v152_v25 = vld [vmem:[%s5755_s2 + $0x1d0] sm:$0xff]  ;;  %v151_v26 = vld [vmem:[%s5755_s2 + $0x1c8] sm:$0xff] }
  0x1e   :  { %235 = vperm.xlu1 %3753, %v109_v31   ;;  %230 = vperm.xlu0 %3752, %v108_v32   ;;  %v153_v24 = vld [vmem:[%s5755_s2 + $0x1d8] sm:$0xff]  ;;  %v150_v27 = vld [vmem:[%s5755_s2 + $0x1c0] sm:$0xff]  ;;  %v148_v29 = vld [vmem:[%s5755_s2 + $0x1b0] sm:$0xff] }
  0x1f   :  { %3696 = vmatmul.mubr.msk.bf16.gmra.mxu0 %vm643_vm1, %v3769_v33  ;;  %v149_v28 = vld [vmem:[%s5755_s2 + $0x1b8] sm:$0xff]  ;;  %v147_v30 = vld [vmem:[%s5755_s2 + $0x1a8] sm:$0xff]  ;;  %v146_v31 = vld [vmem:[%s5755_s2 + $0x1a0] sm:$0xff] }
  0x20   :  { %3728 = vmatmul.mubr.msk.bf16.gmra.mxu1 %vm643_vm1, %v3770_v34  ;;  %3699 = vmatprep.mubr.msk.bf16.mxu0 %vm643_vm1, %v3771_v36  ;;  %v145_v32 = vld [vmem:[%s5755_s2 + $0x198] sm:$0xff]  ;;  %v144_v33 = vld [vmem:[%s5755_s2 + $0x190] sm:$0xff]  ;;  %v143_v34 = vld [vmem:[%s5755_s2 + $0x188] sm:$0xff] }
  0x21   :  { %3731 = vmatprep.mubr.msk.bf16.mxu1 %vm643_vm1, %v3772_v38  ;;  %v1258_v38 = vld [vmem:[%s5758_s4 + $0x8] sm:$0xff] }
  0x22   :  { %245 = vperm.xlu1 %3753, %v111_v35   ;;  %240 = vperm.xlu0 %3752, %v110_v37   ;;  %v142_v35 = vld [vmem:[%s5755_s2 + $0x180] sm:$0xff] }
  0x26   :  { %255 = vperm.xlu1 %3753, %v113_v39   ;;  %250 = vperm.xlu0 %3752, %v112_v40   ;;  %v1257_v39 = vld [vmem:[%s5758_s4] sm:$0xff] }
  0x27   :  { %3700 = vmatmul.mubr.msk.bf16.gmra.mxu0 %vm643_vm1, %v3773_v41 }
  0x28   :  { %3732 = vmatmul.mubr.msk.bf16.gmra.mxu1 %vm643_vm1, %v3774_v42  ;;  %3703 = vmatprep.mubr.msk.bf16.mxu0 %vm643_vm1, %v3775_v43  ;;  %v1260_v42 = vld [vmem:[%s5758_s4 + $0x18] sm:$0xff]  ;;  %v1259_v43 = vld [vmem:[%s5758_s4 + $0x10] sm:$0xff] }
  0x29   :  { %3735 = vmatprep.mubr.msk.bf16.mxu1 %vm643_vm1, %v3776_v46  ;;  %v1262_v46 = vld [vmem:[%s5758_s4 + $0x28] sm:$0xff] }
  0x2a   :  { %265 = vperm.xlu1 %3753, %v115_v44   ;;  %260 = vperm.xlu0 %3752, %v114_v45  }
  0x2e   :  { %275 = vperm.xlu1 %3753, %v117_v47   ;;  %270 = vperm.xlu0 %3752, %v116_v48   ;;  %v1261_v47 = vld [vmem:[%s5758_s4 + $0x20] sm:$0xff] }
  0x2f   :  { %3704 = vmatmul.mubr.msk.bf16.gmra.mxu0 %vm643_vm1, %v3777_v49 }
  0x30   :  { %3736 = vmatmul.mubr.msk.bf16.gmra.mxu1 %vm643_vm1, %v3778_v50  ;;  %3707 = vmatprep.mubr.msk.bf16.mxu0 %vm643_vm1, %v3779_v51  ;;  %v1264_v50 = vld [vmem:[%s5758_s4 + $0x38] sm:$0xff]  ;;  %v1263_v51 = vld [vmem:[%s5758_s4 + $0x30] sm:$0xff] }
  0x31   :  { %3739 = vmatprep.mubr.msk.bf16.mxu1 %vm643_vm1, %v3780_v54  ;;  %v1266_v54 = vld [vmem:[%s5758_s4 + $0x48] sm:$0xff] }
  0x32   :  { %285 = vperm.xlu1 %3753, %v119_v52   ;;  %280 = vperm.xlu0 %3752, %v118_v53  }
  0x36   :  { %295 = vperm.xlu1 %3753, %v121_v55   ;;  %290 = vperm.xlu0 %3752, %v120_v56   ;;  %v1265_v55 = vld [vmem:[%s5758_s4 + $0x40] sm:$0xff] }
  0x37   :  { %3708 = vmatmul.mubr.msk.bf16.gmra.mxu0 %vm643_vm1, %v3781_v57 }
  0x38   :  { %3740 = vmatmul.mubr.msk.bf16.gmra.mxu1 %vm643_vm1, %v3782_v58  ;;  %3711 = vmatprep.mubr.msk.bf16.mxu0 %vm643_vm1, %v3783_v59  ;;  %v1268_v58 = vld [vmem:[%s5758_s4 + $0x58] sm:$0xff]  ;;  %v1267_v59 = vld [vmem:[%s5758_s4 + $0x50] sm:$0xff] }
  0x39   :  { %3743 = vmatprep.mubr.msk.bf16.mxu1 %vm643_vm1, %v3784_v62  ;;  %v1270_v62 = vld [vmem:[%s5758_s4 + $0x68] sm:$0xff] }
  0x3a   :  { %305 = vperm.xlu1 %3753, %v123_v60   ;;  %300 = vperm.xlu0 %3752, %v122_v61  }
  0x3e   :  { %315 = vperm.xlu1 %3753, %v125_v63   ;;  %310 = vperm.xlu0 %3752, %v124_v1   ;;  %v1269_v63 = vld [vmem:[%s5758_s4 + $0x60] sm:$0xff] }
  0x3f   :  { %3712 = vmatmul.mubr.msk.bf16.gmra.mxu0 %vm643_vm1, %v3785_v2 }
  0x40   :  { %3744 = vmatmul.mubr.msk.bf16.gmra.mxu1 %vm643_vm1, %v3786_v3  ;;  %v1272_v3 = vld [vmem:[%s5758_s4 + $0x78] sm:$0xff] }
  0x42   :  { %325 = vperm.xlu1 %3753, %v127_v4   ;;  %320 = vperm.xlu0 %3752, %v126_v5   ;;  %v1271_v4 = vld [vmem:[%s5758_s4 + $0x70] sm:$0xff] }
  0x46   :  { %390 = vperm.xlu1 %3753, %v140_v6   ;;  %330 = vperm.xlu0 %3752, %v128_v7   ;;  %v1274_v7 = vld [vmem:[%s5758_s4 + $0x88] sm:$0xff] }
  0x4a   :  { %380 = vperm.xlu1 %3753, %v138_v8   ;;  %395 = vperm.xlu0 %3752, %v141_v9   ;;  %v1273_v8 = vld [vmem:[%s5758_s4 + $0x80] sm:$0xff] }
  0x4e   :  { %370 = vperm.xlu1 %3753, %v136_v10   ;;  %385 = vperm.xlu0 %3752, %v139_v11   ;;  %v1276_v11 = vld [vmem:[%s5758_s4 + $0x98] sm:$0xff] }
  0x52   :  { %360 = vperm.xlu1 %3753, %v134_v12   ;;  %375 = vperm.xlu0 %3752, %v137_v13   ;;  %v1275_v12 = vld [vmem:[%s5758_s4 + $0x90] sm:$0xff] }
  0x56   :  { %350 = vperm.xlu1 %3753, %v132_v14   ;;  %365 = vperm.xlu0 %3752, %v135_v15   ;;  %v1278_v15 = vld [vmem:[%s5758_s4 + $0xa8] sm:$0xff] }
  0x5a   :  { %340 = vperm.xlu1 %3753, %v130_v16   ;;  %355 = vperm.xlu0 %3752, %v133_v17   ;;  %v1277_v16 = vld [vmem:[%s5758_s4 + $0xa0] sm:$0xff] }
  0x5e   :  { %335 = vperm.xlu1 %3753, %v129_v18   ;;  %345 = vperm.xlu0 %3752, %v131_v19   ;;  %v3789_v19 = vld [vmem:[%s5759_s3 + $0x4] ss:$16 sps:$4 sm:$0xff]  }
  0x5f   :  { %2313 = vmatprep.mubr.bf16.mxu1 %v3789_v19 }
  0x62   :  { %475 = vperm.xlu1 %3753, %v157_v20   ;;  %470 = vperm.xlu0 %3752, %v156_v21   ;;  %v1280_v20 = vld [vmem:[%s5758_s4 + $0xb8] sm:$0xff]  ;;  %v1279_v21 = vld [vmem:[%s5758_s4 + $0xb0] sm:$0xff] }
  0x66   :  { %465 = vperm.xlu1 %3753, %v155_v22   ;;  %460 = vperm.xlu0 %3752, %v154_v23   ;;  %v3792_v22 = vld [vmem:[%s5759_s3 + $0xc] ss:$16 sps:$4 sm:$0xff]  }
  0x67   :  { %2602 = vmatprep.mubr.bf16.mxu0 %v3792_v22  ;;  %v1297_v22 = vld [vmem:[%s5758_s4 + $0x140] sm:$0xff] }
  0x6a   :  { %455 = vperm.xlu1 %3753, %v153_v24   ;;  %450 = vperm.xlu0 %3752, %v152_v25   ;;  %v1282_v25 = vld [vmem:[%s5758_s4 + $0xc8] sm:$0xff] }
  0x6e   :  { %445 = vperm.xlu1 %3753, %v151_v26   ;;  %440 = vperm.xlu0 %3752, %v150_v27   ;;  %v1281_v26 = vld [vmem:[%s5758_s4 + $0xc0] sm:$0xff] }
  0x72   :  { %435 = vperm.xlu1 %3753, %v149_v28   ;;  %430 = vperm.xlu0 %3752, %v148_v29   ;;  %v1284_v29 = vld [vmem:[%s5758_s4 + $0xd8] sm:$0xff] }
  0x76   :  { %425 = vperm.xlu1 %3753, %v147_v30   ;;  %420 = vperm.xlu0 %3752, %v146_v31   ;;  %v1283_v30 = vld [vmem:[%s5758_s4 + $0xd0] sm:$0xff] }
  0x7a   :  { %415 = vperm.xlu1 %3753, %v145_v32   ;;  %410 = vperm.xlu0 %3752, %v144_v33   ;;  %v1286_v33 = vld [vmem:[%s5758_s4 + $0xe8] sm:$0xff] }
  0x7d   :  { %v4351_v36 = vpop.permute.xlu1 %170  ;;  %v4353_v37 = vpop.permute.xlu0 %160 }
  0x7e   :  { %5765 = vst [vmem:[#allocation3_spill] sm:$0xff] %v4353_v37  ;;  %405 = vperm.xlu1 %3753, %v143_v34   ;;  %400 = vperm.xlu0 %3752, %v142_v35   ;;  %v1285_v34 = vld [vmem:[%s5758_s4 + $0xe0] sm:$0xff] }
  0x81   :  { %v4361_v40 = vpop.permute.xlu1 %175  ;;  %v4363_v41 = vpop.permute.xlu0 %165 }
  0x82   :  { %5766 = vst [vmem:[#allocation4_spill] sm:$0xff] %v4363_v41  ;;  %1328 = vperm.xlu1 %3753, %v1258_v38   ;;  %1323 = vperm.xlu0 %3752, %v1257_v39   ;;  %v1288_v38 = vld [vmem:[%s5758_s4 + $0xf8] sm:$0xff] }
  0x85   :  { %v4371_v44 = vpop.permute.xlu1 %185  ;;  %v4373_v45 = vpop.permute.xlu0 %180 }
  0x86   :  { %1338 = vperm.xlu1 %3753, %v1260_v42   ;;  %1333 = vperm.xlu0 %3752, %v1259_v43   ;;  %v1287_v42 = vld [vmem:[%s5758_s4 + $0xf0] sm:$0xff]  ;;  %v1290_v43 = vld [vmem:[%s5758_s4 + $0x108] sm:$0xff] }
  0x89   :  { %v4381_v48 = vpop.permute.xlu1 %195  ;;  %v4383_v49 = vpop.permute.xlu0 %190 }
  0x8a   :  { %1348 = vperm.xlu1 %3753, %v1262_v46   ;;  %1343 = vperm.xlu0 %3752, %v1261_v47   ;;  %v1289_v46 = vld [vmem:[%s5758_s4 + $0x100] sm:$0xff] }
  0x8d   :  { %v4391_v52 = vpop.permute.xlu1 %205  ;;  %v4393_v53 = vpop.permute.xlu0 %200 }
  0x8e   :  { %1358 = vperm.xlu1 %3753, %v1264_v50   ;;  %1353 = vperm.xlu0 %3752, %v1263_v51   ;;  %v1292_v51 = vld [vmem:[%s5758_s4 + $0x118] sm:$0xff] }
  0x91   :  { %v4401_v56 = vpop.permute.xlu1 %215  ;;  %v4403_v57 = vpop.permute.xlu0 %210 }
  0x92   :  { %1368 = vperm.xlu1 %3753, %v1266_v54   ;;  %1363 = vperm.xlu0 %3752, %v1265_v55   ;;  %v1291_v54 = vld [vmem:[%s5758_s4 + $0x110] sm:$0xff] }
  0x95   :  { %v4411_v60 = vpop.permute.xlu1 %225  ;;  %v4413_v61 = vpop.permute.xlu0 %220 }
  0x96   :  { %1378 = vperm.xlu1 %3753, %v1268_v58   ;;  %1373 = vperm.xlu0 %3752, %v1267_v59   ;;  %v1294_v58 = vld [vmem:[%s5758_s4 + $0x128] sm:$0xff]  ;;  %v1293_v59 = vld [vmem:[%s5758_s4 + $0x120] sm:$0xff] }
  0x99   :  { %v4421_v1 = vpop.permute.xlu1 %235  ;;  %v4423_v2 = vpop.permute.xlu0 %230 }
  0x9a   :  { %1388 = vperm.xlu1 %3753, %v1270_v62   ;;  %1383 = vperm.xlu0 %3752, %v1269_v63  }
  0x9d   :  { %v4431_v5 = vpop.permute.xlu1 %245  ;;  %v4433_v6 = vpop.permute.xlu0 %240 }
  0x9e   :  { %5767 = vst [vmem:[#allocation5_spill] sm:$0xff] %v4431_v5  ;;  %5768 = vst [vmem:[#allocation6_spill] sm:$0xff] %v4433_v6  ;;  %1398 = vperm.xlu1 %3753, %v1272_v3   ;;  %1393 = vperm.xlu0 %3752, %v1271_v4   ;;  %v1303_v5 = vld [vmem:[%s5758_s4 + $0x170] sm:$0xff] }
  0xa1   :  { %v4441_v9 = vpop.permute.xlu1 %255  ;;  %v4443_v10 = vpop.permute.xlu0 %250 }
  0xa2   :  { %5769 = vst [vmem:[#allocation7_spill] sm:$0xff] %v4441_v9  ;;  %5770 = vst [vmem:[#allocation8_spill] sm:$0xff] %v4443_v10  ;;  %1408 = vperm.xlu1 %3753, %v1274_v7   ;;  %1403 = vperm.xlu0 %3752, %v1273_v8   ;;  %v1296_v7 = vld [vmem:[%s5758_s4 + $0x138] sm:$0xff] }
  0xa5   :  { %v4451_v13 = vpop.permute.xlu1 %265  ;;  %v4453_v14 = vpop.permute.xlu0 %260 }
  0xa6   :  { %5771 = vst [vmem:[#allocation9_spill] sm:$0xff] %v4451_v13  ;;  %5772 = vst [vmem:[#allocation10_spill] sm:$0xff] %v4453_v14  ;;  %1418 = vperm.xlu1 %3753, %v1276_v11   ;;  %1413 = vperm.xlu0 %3752, %v1275_v12   ;;  %v1295_v11 = vld [vmem:[%s5758_s4 + $0x130] sm:$0xff]  ;;  %v1305_v13 = vld [vmem:[%s5758_s4 + $0x180] sm:$0xff] }
  0xa9   :  { %v4461_v17 = vpop.permute.xlu1 %275  ;;  %v4463_v18 = vpop.permute.xlu0 %270 }
  0xaa   :  { %5773 = vst [vmem:[#allocation11_spill] sm:$0xff] %v4461_v17  ;;  %5774 = vst [vmem:[#allocation12_spill] sm:$0xff] %v4463_v18  ;;  %1428 = vperm.xlu1 %3753, %v1278_v15   ;;  %1423 = vperm.xlu0 %3752, %v1277_v16  }
  0xad   :  { %v4477_v23 = vpop.permute.xlu1 %285  ;;  %v4479_v24 = vpop.permute.xlu0 %280 }
  0xae   :  { %5775 = vst [vmem:[#allocation13_spill] sm:$0xff] %v4477_v23  ;;  %5776 = vst [vmem:[#allocation14_spill] sm:$0xff] %v4479_v24  ;;  %1438 = vperm.xlu1 %3753, %v1280_v20   ;;  %1433 = vperm.xlu0 %3752, %v1279_v21   ;;  %v1298_v21 = vld [vmem:[%s5758_s4 + $0x148] sm:$0xff] }
  0xb1   :  { %v4487_v27 = vpop.permute.xlu1 %295  ;;  %v4489_v28 = vpop.permute.xlu0 %290 }
  0xb2   :  { %5777 = vst [vmem:[#allocation15_spill] sm:$0xff] %v4487_v27  ;;  %5778 = vst [vmem:[#allocation16_spill] sm:$0xff] %v4489_v28  ;;  %1448 = vperm.xlu1 %3753, %v1282_v25   ;;  %1443 = vperm.xlu0 %3752, %v1281_v26  }
  0xb5   :  { %v4497_v31 = vpop.permute.xlu1 %305  ;;  %v4499_v32 = vpop.permute.xlu0 %300 }
  0xb6   :  { %5779 = vst [vmem:[#allocation17_spill] sm:$0xff] %v4497_v31  ;;  %5780 = vst [vmem:[#allocation18_spill] sm:$0xff] %v4499_v32  ;;  %1458 = vperm.xlu1 %3753, %v1284_v29   ;;  %1453 = vperm.xlu0 %3752, %v1283_v30   ;;  %v1307_v31 = vld [vmem:[%s5758_s4 + $0x190] sm:$0xff] }
  0xb9   :  { %v4507_v35 = vpop.permute.xlu1 %315  ;;  %v4512_v39 = vpop.permute.xlu0 %310 }
  0xba   :  { %5781 = vst [vmem:[#allocation19_spill] sm:$0xff] %v4507_v35  ;;  %1468 = vperm.xlu1 %3753, %v1286_v33   ;;  %1463 = vperm.xlu0 %3752, %v1285_v34   ;;  %5782 = vst [vmem:[#allocation20_spill] sm:$0xff] %v4512_v39  ;;  %v1300_v34 = vld [vmem:[%s5758_s4 + $0x158] sm:$0xff] }
  0xbd   :  { %v4523_v47 = vpop.permute.xlu1 %325  ;;  %v4525_v50 = vpop.permute.xlu0 %320 }
  0xbe   :  { %1478 = vperm.xlu1 %3753, %v1288_v38   ;;  %1473 = vperm.xlu0 %3752, %v1287_v42   ;;  %5783 = vst [vmem:[#allocation21_spill] sm:$0xff] %v4523_v47  ;;  %5784 = vst [vmem:[#allocation22_spill] sm:$0xff] %v4525_v50 }
  0xc1   :  { %v4533_v55 = vpop.permute.xlu1 %390  ;;  %v4541_v62 = vpop.permute.xlu0 %330 }
  0xc2   :  { %1488 = vperm.xlu1 %3753, %v1290_v43   ;;  %1483 = vperm.xlu0 %3752, %v1289_v46   ;;  %v1299_v43 = vld [vmem:[%s5758_s4 + $0x150] sm:$0xff] }
  0xc5   :  { %v4557_v12 = vpop.permute.xlu1 %380  ;;  %v396_v16 = vpop.permute.xlu0 %395 }
  0xc6   :  { %1498 = vperm.xlu1 %3753, %v1292_v51   ;;  %1493 = vperm.xlu0 %3752, %v1291_v54  }
  0xc7   :  { %v4543_v63 = vpop.f32.mrf.mxu0 }
  0xc8   :  { %v4545_v3 = vpop.f32.mrf.mxu1 }
  0xc9   :  { %5785 = vst [vmem:[#allocation23_spill] sm:$0xff] %v4545_v3  ;;  %v4547_v4 = vpop.f32.mrf.mxu0  ;;  %v4577_v30 = vpop.permute.xlu1 %370 }
  0xca   :  { %1508 = vperm.xlu1 %3753, %v1294_v58   ;;  %1503 = vperm.xlu0 %3752, %v1293_v59   ;;  %5786 = vst [vmem:[#allocation24_spill] sm:$0xff] %v4547_v4  ;;  %v4552_v8 = vpop.f32.mrf.mxu1  ;;  %v386_v38 = vpop.permute.xlu0 %385  ;;  %v1302_v58 = vld [vmem:[%s5758_s4 + $0x168] sm:$0xff]  ;;  %v1301_v59 = vld [vmem:[%s5758_s4 + $0x160] sm:$0xff] }
  0xcb   :  { %5787 = vst [vmem:[#allocation25_spill] sm:$0xff] %v4552_v8  ;;  %v4559_v15 = vpop.f32.mrf.mxu0 }
  0xcc   :  { %v4561_v19 = vpop.f32.mrf.mxu1 }
  0xcd   :  { %v4563_v20 = vpop.f32.mrf.mxu0 }
  0xce   :  { %1518 = vperm.xlu1 %3753, %v1296_v7   ;;  %1513 = vperm.xlu0 %3752, %v1295_v11   ;;  %5788 = vst [vmem:[#allocation26_spill] sm:$0xff] %v4563_v20  ;;  %v4571_v25 = vpop.f32.mrf.mxu1  ;;  %v4603_v11 = vpop.permute.xlu1 %360 }
  0xcf   :  { %5789 = vst [vmem:[#allocation27_spill] sm:$0xff] %v4571_v25  ;;  %v4573_v26 = vpop.f32.mrf.mxu0 }
  0xd0   :  { %v4575_v29 = vpop.f32.mrf.mxu1 }
  0xd1   :  { %v4579_v33 = vpop.f32.mrf.mxu0 }
  0xd2   :  { %1528 = vperm.xlu1 %3753, %v1298_v21   ;;  %1523 = vperm.xlu0 %3752, %v1297_v22   ;;  %v4584_v42 = vpop.f32.mrf.mxu1  ;;  %v376_v22 = vpop.permute.xlu0 %375 }
  0xd3   :  { %v4589_v46 = vpop.f32.mrf.mxu0  ;;  %v4617_v14 = vpop.permute.xlu1 %350 }
  0xd4   :  { %v4591_v51 = vpop.f32.mrf.mxu1 }
  0xd5   :  { %v4593_v54 = vpop.f32.mrf.mxu0 }
  0xd6   :  { %1538 = vperm.xlu1 %3753, %v1300_v34   ;;  %1533 = vperm.xlu0 %3752, %v1299_v43   ;;  %v4601_v7 = vpop.f32.mrf.mxu1  ;;  %v1304_v43 = vld [vmem:[%s5758_s4 + $0x178] sm:$0xff]  ;;  %v366_v18 = vpop.permute.xlu0 %365 }
  0xd7   :  { %v3693_v21 = vpop.f32.mrf.mxu0  ;;  %v4632_v32 = vpop.permute.xlu1 %340 }
  0xd8   :  { %v4605_v0 = vpop.f32.mrf.mxu1 }
  0xd9   :  { %v4607_v34 = vpop.f32.mrf.mxu0 }
  0xda   :  { %1548 = vperm.xlu1 %3753, %v1302_v58   ;;  %1543 = vperm.xlu0 %3752, %v1301_v59   ;;  %v4612_v6 = vpop.f32.mrf.mxu1  ;;  %v1306_v59 = vld [vmem:[%s5758_s4 + $0x188] sm:$0xff]  ;;  %v4635_v8 = vpop.permute.xlu0 %355 }
  0xdb   :  { %v3694_v10 = vpop.f32.mrf.mxu0 }
  0xdc   :  { %v3726_v9 = vpop.f32.mrf.mxu1  ;;  %v822_v47 = vadd.f32 %v3694_v10, %v4401_v56  ;;  %v1311_v56 = vld [vmem:[%s5758_s4 + $0x1b0] sm:$0xff] }
  0xdd   :  { %v813_v58 = vpop.f32.mrf.mxu0 }
  0xde   :  { %1558 = vperm.xlu1 %3753, %v1304_v43   ;;  %1553 = vperm.xlu0 %3752, %v1303_v5   ;;  %v941_v17 = vpop.f32.mrf.mxu1  ;;  %v1308_v5 = vld [vmem:[%s5758_s4 + $0x198] sm:$0xff] }
  0xdf   :  { %v3697_v24 = vpop.f32.mrf.mxu0 }
  0xe0   :  { %v3729_v23 = vpop.f32.mrf.mxu1  ;;  %v835_v43 = vadd.f32 %v3697_v24, %v4423_v2  ;;  %v1310_v2 = vld [vmem:[%s5758_s4 + $0x1a8] sm:$0xff]  ;;  %v1309_v24 = vld [vmem:[%s5758_s4 + $0x1a0] sm:$0xff] }
  0xe1   :  { %v826_v28 = vpop.f32.mrf.mxu0  ;;  %v963_v35 = vadd.f32 %v3729_v23, %v4533_v55 }
  0xe2   :  { %1568 = vperm.xlu1 %3753, %v1306_v59   ;;  %1563 = vperm.xlu0 %3752, %v1305_v13   ;;  %v954_v27 = vpop.f32.mrf.mxu1  ;;  %v1047_v37 = vmax.f32 %v835_v43, 0.0  ;;  %v827_v23 = vadd.f32 %v826_v28, %v4413_v61  ;;  %v4652_v43 = vpop.permute.xlu1 %335  ;;  %v950_v61 = vadd.f32 %v3726_v9, %v376_v22  ;;  %v947_v9 = vadd.f32 %v4605_v0, %v4577_v30 }
  0xe3   :  { %v3698_v39 = vpop.f32.mrf.mxu0 }
  0xe4   :  { %v838_v13 = vadd.f32 %v3698_v39, %v4421_v1  ;;  %v3730_v59 = vpop.f32.mrf.mxu1  ;;  %v1079_v39 = vmax.f32 %v963_v35, 0.0  ;;  %v4657_v35 = vpop.permute.xlu0 %345  ;;  %v1076_v22 = vmax.f32 %v950_v61, 0.0 }
  0xe5   :  { %v966_v50 = vadd.f32 %v3730_v59, %v396_v16  ;;  %v829_v4 = vpop.f32.mrf.mxu0  ;;  %v955_v16 = vadd.f32 %v954_v27, %v4557_v12  ;;  %v819_v27 = vadd.f32 %v3693_v21, %v4403_v57  ;;  %v5790_v12 = vmov 0  }
  0xe6   :  { %1578 = vperm.xlu1 %3753, %v1308_v5   ;;  %1573 = vperm.xlu0 %3752, %v1307_v31   ;;  %v1048_v55 = vmax.f32 %v838_v13, 0.0  ;;  %v830_v25 = vadd.f32 %v829_v4, %v4411_v60  ;;  %v957_v1 = vpop.f32.mrf.mxu1 }
  0xe7   :  { %v1080_v31 = vmax.f32 %v966_v50, 0.0  ;;  %v958_v5 = vadd.f32 %v957_v1, %v386_v38  ;;  %v4647_v59 = vpop.f32.mrf.mxu0  ;;  %v1045_v50 = vmax.f32 %v827_v23, 0.0  ;;  %v1077_v10 = vmax.f32 %v955_v16, 0.0 }
  0xe8   :  { %v1232_v20 = vpack.c.bf16 %v1048_v55, %v1047_v37  ;;  %v1046_v41 = vmax.f32 %v830_v25, 0.0  ;;  %v4650_v3 = vpop.f32.mrf.mxu1  ;;  %v1312_v37 = vld [vmem:[%s5758_s4 + $0x1b8] sm:$0xff]  ;;  %v1044_v25 = vmax.f32 %v822_v47, 0.0  ;;  %v1043_v30 = vmax.f32 %v819_v27, 0.0  ;;  %v4690_v47 = vpop.permute.xlu1 %475 }
  0xe9   :  { %v1248_v28 = vpack.c.bf16 %v1080_v31, %v1079_v39  ;;  %v1078_v13 = vmax.f32 %v958_v5, 0.0  ;;  %v4654_v60 = vpop.f32.mrf.mxu0  ;;  %v811_v23 = vadd.f32 %v4607_v34, %v4393_v53  ;;  %v806_v53 = vadd.f32 %v4589_v46, %v4381_v48  ;;  %v4697_v1 = vpop.permute.xlu0 %470 }
  0xea   :  { %1588 = vperm.xlu1 %3753, %v1310_v2   ;;  %1583 = vperm.xlu0 %3752, %v1309_v24   ;;  %v4659_v4 = vpop.f32.mrf.mxu1  ;;  %v1231_v38 = vpack.c.bf16 %v1046_v41, %v1045_v50  ;;  %v942_v2 = vadd.f32 %v941_v17, %v366_v18  ;;  %v1314_v41 = vld [vmem:[%s5758_s4 + $0x1c8] sm:$0xff]  ;;  %v1075_v17 = vmax.f32 %v947_v9, 0.0  ;;  %v939_v18 = vadd.f32 %v4612_v6, %v4603_v11 }
  0xeb   :  { %2282 = vmatpush1.bf16.msra.mxu1 %v1232_v20  ;;  %2571 = vmatpush1.bf16.msra.mxu0 %v1248_v28  ;;  %v4669_v57 = vpop.f32.mrf.mxu0  ;;  %v814_v20 = vadd.f32 %v813_v58, %v4391_v52  ;;  %v1247_v24 = vpack.c.bf16 %v1078_v13, %v1077_v10  ;;  %v1313_v52 = vld [vmem:[%s5758_s4 + $0x1c0] sm:$0xff]  ;;  %v1230_v34 = vpack.c.bf16 %v1044_v25, %v1043_v30  ;;  %v1041_v46 = vmax.f32 %v811_v23, 0.0  ;;  %v1316_v28 = vld [vmem:[%s5758_s4 + $0x1d8] sm:$0xff] }
  0xec   :  { %2283 = vmatprep.subr.bf16.mxu1 %v5790_v12  ;;  %v4673_v21 = vpop.f32.mrf.mxu1  ;;  %2572 = vmatprep.subr.bf16.mxu0 %v5790_v12  ;;  %v934_v6 = vadd.f32 %v4591_v51, %v4635_v8  ;;  %v1246_v11 = vpack.c.bf16 %v1076_v22, %v1075_v17  ;;  %v1074_v31 = vmax.f32 %v942_v2, 0.0  ;;  %v803_v48 = vadd.f32 %v4573_v26, %v4383_v49  ;;  %v1315_v8 = vld [vmem:[%s5758_s4 + $0x1d0] sm:$0xff] }
  0xed   :  { %v4676_v0 = vpop.f32.mrf.mxu0  ;;  %v1042_v39 = vmax.f32 %v814_v20, 0.0  ;;  %v931_v51 = vadd.f32 %v4575_v29, %v4617_v14  ;;  %v1073_v13 = vmax.f32 %v939_v18, 0.0  ;;  %v1040_v49 = vmax.f32 %v806_v53, 0.0  ;;  %v4728_v29 = vpop.permute.xlu1 %465 }
  0xee   :  { %1598 = vperm.xlu1 %3753, %v1312_v37   ;;  %1593 = vperm.xlu0 %3752, %v1311_v56   ;;  %v4680_v55 = vpop.f32.mrf.mxu1  ;;  %v798_v26 = vadd.f32 %v4593_v54, %v4371_v44  ;;  %v1072_v56 = vmax.f32 %v934_v6, 0.0  ;;  %v926_v9 = vadd.f32 %v4601_v7, %v4657_v35  ;;  %v1039_v25 = vmax.f32 %v803_v48, 0.0  ;;  %v4734_v54 = vpop.permute.xlu0 %460  ;;  %v1318_v7 = vld [vmem:[%s5758_s4 + $0x1e8] sm:$0xff]  ;;  %v1317_v35 = vld [vmem:[%s5758_s4 + $0x1e0] sm:$0xff]  ;;  %v5793_v6 = vld [vmem:[#allocation26_spill] sm:$0xff] }
  0xef   :  { %2284 = vmatpush1.bf16.msra.mxu1 %v1231_v38  ;;  %2573 = vmatpush1.bf16.msra.mxu0 %v1247_v24  ;;  %v4692_v58 = vpop.f32.mrf.mxu0  ;;  %v1229_v50 = vpack.c.bf16 %v1042_v39, %v1041_v46  ;;  %v1245_v14 = vpack.c.bf16 %v1074_v31, %v1073_v13  ;;  %v795_v44 = vadd.f32 %v4579_v33, %v4373_v45  ;;  %v1071_v38 = vmax.f32 %v931_v51, 0.0  ;;  %v5792_v39 = vld [vmem:[#allocation4_spill] sm:$0xff] }
  0xf0   :  { %2285 = vmatprep.subr.bf16.mxu1 %v5790_v12  ;;  %v4699_v16 = vpop.f32.mrf.mxu1  ;;  %2574 = vmatprep.subr.bf16.mxu0 %v5790_v12  ;;  %v923_v22 = vadd.f32 %v4584_v42, %v4632_v32  ;;  %v790_v45 = vadd.f32 %v4559_v15, %v4361_v40  ;;  %v1228_v33 = vpack.c.bf16 %v1040_v49, %v1039_v25  ;;  %v1038_v24 = vmax.f32 %v798_v26, 0.0  ;;  %v1320_v15 = vld [vmem:[%s5758_s4 + $0x1f8] sm:$0xff]  ;;  %v2924_v25 = vld [vmem:[%s5760_s5 + $0x8] sm:$0xff] }
  0xf1   :  { %v4704_v5 = vpop.f32.mrf.mxu0  ;;  %v1244_v23 = vpack.c.bf16 %v1072_v56, %v1071_v38  ;;  %v787_v42 = vadd.f32 %v4543_v63, %v4351_v36  ;;  %v1037_v17 = vmax.f32 %v795_v44, 0.0  ;;  %v5797_v56 = vld [vmem:[#allocation24_spill] sm:$0xff]  ;;  %v2923_v44 = vld [vmem:[%s5760_s5] sm:$0xff]  ;;  %v5799_v38 = vld [vmem:[#allocation25_spill] sm:$0xff] }
  0xf2   :  { %1608 = vperm.xlu1 %3753, %v1314_v41   ;;  %1603 = vperm.xlu0 %3752, %v1313_v52   ;;  %v4708_v61 = vpop.f32.mrf.mxu1  ;;  %v918_v41 = vadd.f32 %v4561_v19, %v4652_v43  ;;  %v1070_v52 = vmax.f32 %v926_v9, 0.0  ;;  %v1319_v19 = vld [vmem:[%s5758_s4 + $0x1f0] sm:$0xff]  ;;  %v5791_v43 = vld [vmem:[#allocation23_spill] sm:$0xff]  ;;  %v1069_v53 = vmax.f32 %v923_v22, 0.0  ;;  %v1036_v63 = vmax.f32 %v790_v45, 0.0  ;;  %v4777_v48 = vpop.permute.xlu0 %450 }
  0xf3   :  { %2286 = vmatpush1.bf16.msra.mxu1 %v1230_v34  ;;  %2575 = vmatpush1.bf16.msra.mxu0 %v1246_v11  ;;  %v4718_v27 = vpop.f32.mrf.mxu0  ;;  %v915_v18 = vadd.f32 %v5791_v43, %v4541_v62  ;;  %v4770_v34 = vpop.permute.xlu1 %455  ;;  %v782_v11 = vadd.f32 %v5793_v6, %v5792_v39  ;;  %v1227_v31 = vpack.c.bf16 %v1038_v24, %v1037_v17  ;;  %v5794_v62 = vld [vmem:[#allocation21_spill] sm:$0xff]  ;;  %v1035_v26 = vmax.f32 %v787_v42, 0.0  ;;  %v5800_v43 = vld [vmem:[#allocation20_spill] sm:$0xff] }
  0xf4   :  { %2287 = vmatprep.subr.bf16.mxu1 %v5790_v12  ;;  %v4723_v37 = vpop.f32.mrf.mxu1  ;;  %2576 = vmatprep.subr.bf16.mxu0 %v5790_v12  ;;  %v1068_v51 = vmax.f32 %v918_v41, 0.0  ;;  %v1243_v13 = vpack.c.bf16 %v1070_v52, %v1069_v53  ;;  %v2925_v39 = vld [vmem:[%s5760_s5 + $0x10] sm:$0xff] }
  0xf5   :  { %v4730_v10 = vpop.f32.mrf.mxu0  ;;  %v1034_v24 = vmax.f32 %v782_v11, 0.0 }
  0xf6   :  { %1618 = vperm.xlu1 %3753, %v1316_v28   ;;  %1613 = vperm.xlu0 %3752, %v1315_v8   ;;  %v4736_v20 = vpop.f32.mrf.mxu1  ;;  %v5795_v28 = vld [vmem:[#allocation27_spill] sm:$0xff] }
  0xf7   :  { %2288 = vmatpush1.bf16.msra.mxu1 %v1229_v50  ;;  %2577 = vmatpush1.bf16.msra.mxu0 %v1245_v14  ;;  %v4746_v2 = vpop.f32.mrf.mxu0  ;;  %v910_v8 = vadd.f32 %v5795_v28, %v5794_v62  ;;  %v5796_v50 = vld [vmem:[#allocation3_spill] sm:$0xff]  ;;  %v4800_v42 = vpop.permute.xlu1 %445 }
  0xf8   :  { %2289 = vmatprep.subr.bf16.mxu1 %v5790_v12  ;;  %v4751_v30 = vpop.f32.mrf.mxu1  ;;  %2578 = vmatprep.subr.bf16.mxu0 %v5790_v12  ;;  %v779_v9 = vadd.f32 %v5797_v56, %v5796_v50  ;;  %v5801_v28 = vld [vmem:[#allocation19_spill] sm:$0xff] }
  0xf9   :  { %v4756_v32 = vpop.f32.mrf.mxu0  ;;  %v1066_v41 = vmax.f32 %v910_v8, 0.0 }
  0xfa   :  { %1628 = vperm.xlu1 %3753, %v1318_v7   ;;  %1623 = vperm.xlu0 %3752, %v1317_v35   ;;  %v4760_v40 = vpop.f32.mrf.mxu1  ;;  %v1067_v7 = vmax.f32 %v915_v18, 0.0  ;;  %v5798_v35 = vld [vmem:[#allocation22_spill] sm:$0xff] }
  0xfb   :  { %2290 = vmatpush1.bf16.msra.mxu1 %v1228_v33  ;;  %2579 = vmatpush1.bf16.msra.mxu0 %v1244_v23  ;;  %v4772_v36 = vpop.f32.mrf.mxu0  ;;  %v907_v22 = vadd.f32 %v5799_v38, %v5798_v35  ;;  %v1226_v33 = vpack.c.bf16 %v1036_v63, %v1035_v26  ;;  %v2926_v63 = vld [vmem:[%s5760_s5 + $0x18] sm:$0xff]  ;;  %v2928_v38 = vld [vmem:[%s5760_s5 + $0x28] sm:$0xff] }
  0xfc   :  { %2291 = vmatprep.subr.bf16.mxu1 %v5790_v12  ;;  %v4779_v46 = vpop.f32.mrf.mxu1  ;;  %2580 = vmatprep.subr.bf16.mxu0 %v5790_v12  ;;  %v1242_v52 = vpack.c.bf16 %v1068_v51, %v1067_v7 }
  0xfd   :  { %v4784_v49 = vpop.f32.mrf.mxu0  ;;  %v1065_v6 = vmax.f32 %v907_v22, 0.0  ;;  %v2927_v22 = vld [vmem:[%s5760_s5 + $0x20] sm:$0xff] }
  0xfe   :  { %1638 = vperm.xlu1 %3753, %v1320_v15   ;;  %1633 = vperm.xlu0 %3752, %v1319_v19   ;;  %v4788_v14 = vpop.f32.mrf.mxu1  ;;  %v1033_v15 = vmax.f32 %v779_v9, 0.0  ;;  %v4802_v19 = vpop.permute.xlu0 %440  ;;  %v5802_v9 = vld [vmem:[#allocation18_spill] sm:$0xff] }
  0xff   :  { %2292 = vmatpush1.bf16.msra.mxu1 %v1227_v31  ;;  %2581 = vmatpush1.bf16.msra.mxu0 %v1243_v13  ;;  %v3713_v45 = vpop.f32.mrf.mxu0  ;;  %v1241_v13 = vpack.c.bf16 %v1066_v41, %v1065_v6  ;;  %v2929_v6 = vld [vmem:[%s5760_s5 + $0x30] sm:$0xff] }
 0x100   :  { %2293 = vmatprep.subr.bf16.mxu1 %v5790_v12  ;;  %v3745_v23 = vpop.f32.mrf.mxu1  ;;  %2582 = vmatprep.subr.bf16.mxu0 %v5790_v12  ;;  %v899_v18 = vadd.f32 %v3713_v45, %v5800_v43  ;;  %v1225_v62 = vpack.c.bf16 %v1034_v24, %v1033_v15 }
 0x101   :  { %v890_v17 = vpop.f32.mrf.mxu0  ;;  %v1027_v11 = vadd.f32 %v3745_v23, %v4697_v1  ;;  %v436_v23 = vpop.permute.xlu1 %435 }
 0x102   :  { %2994 = vperm.xlu1 %3753, %v2924_v25   ;;  %2989 = vperm.xlu0 %3752, %v2923_v44   ;;  %v1018_v53 = vpop.f32.mrf.mxu1  ;;  %v1063_v56 = vmax.f32 %v899_v18, 0.0  ;;  %v891_v25 = vadd.f32 %v890_v17, %v5802_v9  ;;  %v5803_v44 = vld [vmem:[#allocation17_spill] sm:$0xff]  ;;  %v431_v41 = vpop.permute.xlu0 %430  ;;  %v1014_v18 = vadd.f32 %v4779_v46, %v4770_v34  ;;  %v1011_v34 = vadd.f32 %v4751_v30, %v4777_v48 }
 0x103   :  { %2294 = vmatpush1.bf16.msra.mxu1 %v1226_v33  ;;  %2583 = vmatpush1.bf16.msra.mxu0 %v1242_v52  ;;  %v3714_v31 = vpop.f32.mrf.mxu0  ;;  %v1019_v45 = vadd.f32 %v1018_v53, %v4734_v54  ;;  %v5804_v52 = vld [vmem:[#allocation15_spill] sm:$0xff] }
 0x104   :  { %2295 = vmatprep.subr.bf16.mxu1 %v5790_v12  ;;  %v902_v8 = vadd.f32 %v3714_v31, %v5801_v28  ;;  %v3746_v51 = vpop.f32.mrf.mxu1  ;;  %2584 = vmatprep.subr.bf16.mxu0 %v5790_v12  ;;  %v886_v17 = vadd.f32 %v4772_v36, %v5804_v52  ;;  %v2930_v36 = vld [vmem:[%s5760_s5 + $0x38] sm:$0xff]  ;;  %v5806_v31 = vld [vmem:[#allocation13_spill] sm:$0xff]  ;;  %v1092_v28 = vmax.f32 %v1014_v18, 0.0  ;;  %v1091_v9 = vmax.f32 %v1011_v34, 0.0 }
 0x105   :  { %v1030_v26 = vadd.f32 %v3746_v51, %v4690_v47  ;;  %v893_v50 = vpop.f32.mrf.mxu0  ;;  %v1095_v47 = vmax.f32 %v1027_v11, 0.0  ;;  %v1093_v46 = vmax.f32 %v1019_v45, 0.0 }
 0x106   :  { %3004 = vperm.xlu1 %3753, %v2926_v63   ;;  %2999 = vperm.xlu0 %3752, %v2925_v39   ;;  %v1064_v1 = vmax.f32 %v902_v8, 0.0  ;;  %v894_v7 = vadd.f32 %v893_v50, %v5803_v44  ;;  %v1021_v35 = vpop.f32.mrf.mxu1  ;;  %v1061_v39 = vmax.f32 %v891_v25, 0.0  ;;  %v1060_v11 = vmax.f32 %v886_v17, 0.0  ;;  %v421_v30 = vpop.permute.xlu0 %420 }
 0x107   :  { %2296 = vmatpush1.bf16.msra.mxu1 %v1225_v62  ;;  %v1096_v33 = vmax.f32 %v1030_v26, 0.0  ;;  %v1022_v24 = vadd.f32 %v1021_v35, %v4728_v29  ;;  %2585 = vmatpush1.bf16.msra.mxu0 %v1241_v13  ;;  %v5805_v29 = vld [vmem:[#allocation16_spill] sm:$0xff]  ;;  %v1006_v8 = vadd.f32 %v4788_v14, %v4800_v42  ;;  %v426_v13 = vpop.permute.xlu1 %425  ;;  %v5807_v26 = vld [vmem:[#allocation14_spill] sm:$0xff]  ;;  %v1003_v14 = vadd.f32 %v4760_v40, %v4802_v19  ;;  %v5808_v42 = vld [vmem:[#allocation11_spill] sm:$0xff] }
 0x108   :  { %2297 = vmatprep.subr.bf16.mxu1 %v5790_v12  ;;  %v1240_v15 = vpack.c.bf16 %v1064_v1, %v1063_v56  ;;  %v1062_v43 = vmax.f32 %v894_v7, 0.0  ;;  %2586 = vmatprep.subr.bf16.mxu0 %v5790_v12  ;;  %v883_v53 = vadd.f32 %v4746_v2, %v5805_v29  ;;  %v878_v2 = vadd.f32 %v4784_v49, %v5806_v31  ;;  %v2932_v49 = vld [vmem:[%s5760_s5 + $0x48] sm:$0xff]  ;;  %v2931_v56 = vld [vmem:[%s5760_s5 + $0x40] sm:$0xff]  ;;  %v2934_v19 = vld [vmem:[%s5760_s5 + $0x58] sm:$0xff] }
 0x109   :  { %v1256_v63 = vpack.c.bf16 %v1096_v33, %v1095_v47  ;;  %v1094_v54 = vmax.f32 %v1022_v24, 0.0  ;;  %v875_v50 = vadd.f32 %v4756_v32, %v5807_v26  ;;  %v870_v25 = vadd.f32 %v4718_v27, %v5808_v42  ;;  %v2933_v27 = vld [vmem:[%s5760_s5 + $0x50] sm:$0xff] }
 0x10a   :  { %3014 = vperm.xlu1 %3753, %v2928_v38   ;;  %3009 = vperm.xlu0 %3752, %v2927_v22   ;;  %v1239_v62 = vpack.c.bf16 %v1062_v43, %v1061_v39  ;;  %v1059_v48 = vmax.f32 %v883_v53, 0.0  ;;  %v1058_v1 = vmax.f32 %v878_v2, 0.0  ;;  %v998_v44 = vadd.f32 %v4723_v37, %v436_v23  ;;  %v5809_v38 = vld [vmem:[#allocation12_spill] sm:$0xff]  ;;  %v411_v24 = vpop.permute.xlu0 %410 }
 0x10b   :  { %2298 = vmatpush2.bf16.msra.mxu1 %v1240_v15  ;;  %2587 = vmatpush2.bf16.msra.mxu0 %v1256_v63  ;;  %v1255_v51 = vpack.c.bf16 %v1094_v54, %v1093_v46  ;;  %v1254_v7 = vpack.c.bf16 %v1092_v28, %v1091_v9  ;;  %v1090_v35 = vmax.f32 %v1006_v8, 0.0  ;;  %v867_v22 = vadd.f32 %v4692_v58, %v5809_v38  ;;  %v416_v33 = vpop.permute.xlu1 %415  ;;  %v5810_v58 = vld [vmem:[#allocation9_spill] sm:$0xff]  ;;  %v2936_v63 = vld [vmem:[%s5760_s5 + $0x68] sm:$0xff] }
 0x10c   :  { %2299 = vmatprep.subr.bf16.mxu1 %v5790_v12  ;;  %2588 = vmatprep.subr.bf16.mxu0 %v5790_v12  ;;  %v1238_v32 = vpack.c.bf16 %v1060_v11, %v1059_v48  ;;  %v1057_v40 = vmax.f32 %v875_v50, 0.0  ;;  %v995_v47 = vadd.f32 %v4699_v16, %v431_v41  ;;  %v1089_v37 = vmax.f32 %v1003_v14, 0.0  ;;  %v5811_v41 = vld [vmem:[#allocation10_spill] sm:$0xff]  ;;  %v5813_v11 = vld [vmem:[#allocation8_spill] sm:$0xff]  ;;  %v5814_v8 = vld [vmem:[#allocation5_spill] sm:$0xff] }
 0x10d   :  { %v1056_v45 = vmax.f32 %v870_v25, 0.0  ;;  %v862_v23 = vadd.f32 %v4730_v10, %v5810_v58  ;;  %v1088_v17 = vmax.f32 %v998_v44, 0.0  ;;  %v990_v15 = vadd.f32 %v4736_v20, %v426_v13  ;;  %v2935_v10 = vld [vmem:[%s5760_s5 + $0x60] sm:$0xff]  ;;  %v2941_v44 = vld [vmem:[%s5760_s5 + $0x90] sm:$0xff] }
 0x10e   :  { %3024 = vperm.xlu1 %3753, %v2930_v36   ;;  %3019 = vperm.xlu0 %3752, %v2929_v6   ;;  %v1237_v52 = vpack.c.bf16 %v1058_v1, %v1057_v40  ;;  %v1253_v43 = vpack.c.bf16 %v1090_v35, %v1089_v37  ;;  %v1055_v16 = vmax.f32 %v867_v22, 0.0  ;;  %v859_v18 = vadd.f32 %v4704_v5, %v5811_v41  ;;  %v5812_v20 = vld [vmem:[#allocation7_spill] sm:$0xff]  ;;  %v2942_v1 = vld [vmem:[%s5760_s5 + $0x98] sm:$0xff]  ;;  %v2944_v40 = vld [vmem:[%s5760_s5 + $0xa8] sm:$0xff] }
 0x10f   :  { %2300 = vmatpush2.bf16.msra.mxu1 %v1239_v62  ;;  %2589 = vmatpush2.bf16.msra.mxu0 %v1255_v51  ;;  %v1087_v54 = vmax.f32 %v995_v47, 0.0  ;;  %v987_v29 = vadd.f32 %v4708_v61, %v421_v30  ;;  %v854_v53 = vadd.f32 %v4669_v57, %v5812_v20  ;;  %v982_v5 = vadd.f32 %v4673_v21, %v416_v33  ;;  %v406_v2 = vpop.permute.xlu1 %405  ;;  %v401_v62 = vpop.permute.xlu0 %400  ;;  %v2938_v57 = vld [vmem:[%s5760_s5 + $0x78] sm:$0xff]  ;;  %v2937_v21 = vld [vmem:[%s5760_s5 + $0x70] sm:$0xff]  ;;  %v2939_v14 = vld [vmem:[%s5760_s5 + $0x80] sm:$0xff] }
 0x110   :  { %2301 = vmatprep.subr.bf16.mxu1 %v5790_v12  ;;  %2590 = vmatprep.subr.bf16.mxu0 %v5790_v12  ;;  %v1236_v39 = vpack.c.bf16 %v1056_v45, %v1055_v16  ;;  %v1054_v36 = vmax.f32 %v862_v23, 0.0  ;;  %v979_v34 = vadd.f32 %v4650_v3, %v411_v24  ;;  %v1086_v46 = vmax.f32 %v990_v15, 0.0  ;;  %v3787_v38 = vld [vmem:[%s5759_s3] ss:$16 sps:$4 sm:$0xff]   ;;  %v3790_v22 = vld [vmem:[%s5759_s3 + $0x8] ss:$16 sps:$4 sm:$0xff]  }
 0x111   :  { %v1252_v6 = vpack.c.bf16 %v1088_v17, %v1087_v54  ;;  %v851_v61 = vadd.f32 %v4647_v59, %v5813_v11  ;;  %v1053_v31 = vmax.f32 %v859_v18, 0.0  ;;  %v1085_v28 = vmax.f32 %v987_v29, 0.0  ;;  %v2946_v45 = vld [vmem:[%s5760_s5 + $0xb8] sm:$0xff]  ;;  %v2945_v33 = vld [vmem:[%s5760_s5 + $0xb0] sm:$0xff]  ;;  %v2948_v24 = vld [vmem:[%s5760_s5 + $0xc8] sm:$0xff] }
 0x112   :  { %3034 = vperm.xlu1 %3753, %v2932_v49   ;;  %3029 = vperm.xlu0 %3752, %v2931_v56   ;;  %v1052_v3 = vmax.f32 %v854_v53, 0.0  ;;  %v846_v59 = vadd.f32 %v4676_v0, %v5814_v8  ;;  %v1084_v51 = vmax.f32 %v982_v5, 0.0  ;;  %v1083_v30 = vmax.f32 %v979_v34, 0.0  ;;  %v5815_v56 = vld [vmem:[#allocation6_spill] sm:$0xff]  ;;  %v2940_v0 = vld [vmem:[%s5760_s5 + $0x88] sm:$0xff]  ;;  %v2947_v58 = vld [vmem:[%s5760_s5 + $0xc0] sm:$0xff] }
 0x113   :  { %2302 = vmatpush2.bf16.msra.mxu1 %v1238_v32  ;;  %2591 = vmatpush2.bf16.msra.mxu0 %v1254_v7  ;;  %v1235_v13 = vpack.c.bf16 %v1054_v36, %v1053_v31  ;;  %v1251_v48 = vpack.c.bf16 %v1086_v46, %v1085_v28  ;;  %v974_v26 = vadd.f32 %v4680_v55, %v406_v2  ;;  %v1051_v49 = vmax.f32 %v851_v61, 0.0  ;;  %v4942_v47 = vpop.permute.xlu1 %1328  ;;  %v4944_v37 = vpop.permute.xlu0 %1323  ;;  %v3797_v23 = vld [vmem:[%s5759_s3 + $0x20] ss:$16 sps:$4 sm:$0xff]   ;;  %v3801_v16 = vld [vmem:[%s5759_s3 + $0x4c] ss:$16 sps:$4 sm:$0xff]  }
 0x114   :  { %2303 = vmatprep.subr.bf16.mxu1 %v5790_v12  ;;  %2592 = vmatprep.subr.bf16.mxu0 %v5790_v12  ;;  %v971_v50 = vadd.f32 %v4659_v4, %v401_v62  ;;  %v843_v9 = vadd.f32 %v4654_v60, %v5815_v56  ;;  %v1050_v4 = vmax.f32 %v846_v59, 0.0  ;;  %v1250_v42 = vpack.c.bf16 %v1084_v51, %v1083_v30  ;;  %v2950_v41 = vld [vmem:[%s5760_s5 + $0xd8] sm:$0xff]  ;;  %v2949_v18 = vld [vmem:[%s5760_s5 + $0xd0] sm:$0xff]  ;;  %v2952_v54 = vld [vmem:[%s5760_s5 + $0xe8] sm:$0xff] }
 0x115   :  { %v1234_v55 = vpack.c.bf16 %v1052_v3, %v1051_v49  ;;  %v1082_v25 = vmax.f32 %v974_v26, 0.0  ;;  %v2951_v29 = vld [vmem:[%s5760_s5 + $0xe0] sm:$0xff]  ;;  %v3804_v53 = vld [vmem:[%s5759_s3 + $0x48] ss:$16 sps:$4 sm:$0xff]   ;;  %v3807_v5 = vld [vmem:[%s5759_s3 + $0x6c] ss:$16 sps:$4 sm:$0xff]  }
 0x116   :  { %3044 = vperm.xlu1 %3753, %v2934_v19   ;;  %3039 = vperm.xlu0 %3752, %v2933_v27   ;;  %v1081_v32 = vmax.f32 %v971_v50, 0.0  ;;  %v1049_v60 = vmax.f32 %v843_v9, 0.0  ;;  %v3793_v19 = vld [vmem:[%s5759_s3 + $0x24] ss:$16 sps:$4 sm:$0xff]   ;;  %v3795_v27 = vld [vmem:[%s5759_s3 + $0x2c] ss:$16 sps:$4 sm:$0xff]  }
 0x117   :  { %2304 = vmatpush2.bf16.msra.mxu1 %v1237_v52  ;;  %2593 = vmatpush2.bf16.msra.mxu0 %v1253_v43  ;;  %v3798_v52 = vld [vmem:[%s5759_s3 + $0x28] ss:$16 sps:$4 sm:$0xff]   ;;  %v4964_v17 = vpop.permute.xlu1 %1338  ;;  %v4966_v15 = vpop.permute.xlu0 %1333  ;;  %v3799_v43 = vld [vmem:[%s5759_s3 + $0x44] ss:$16 sps:$4 sm:$0xff]   ;;  %v3803_v20 = vld [vmem:[%s5759_s3 + $0x40] ss:$16 sps:$4 sm:$0xff]  }
 0x118   :  { %2305 = vmatprep.subr.bf16.mxu1 %v5790_v12  ;;  %2594 = vmatprep.subr.bf16.mxu0 %v5790_v12  ;;  %v1233_v7 = vpack.c.bf16 %v1050_v4, %v1049_v60  ;;  %v1249_v35 = vpack.c.bf16 %v1082_v25, %v1081_v32  ;;  %v2954_v36 = vld [vmem:[%s5760_s5 + $0xf8] sm:$0xff]  ;;  %v2956_v11 = vld [vmem:[%s5760_s5 + $0x108] sm:$0xff]  ;;  %v2955_v61 = vld [vmem:[%s5760_s5 + $0x100] sm:$0xff] }
 0x119   :  { %v3809_v31 = vld [vmem:[%s5759_s3 + $0x60] ss:$16 sps:$4 sm:$0xff]   ;;  %v3810_v2 = vld [vmem:[%s5759_s3 + $0x68] ss:$16 sps:$4 sm:$0xff]   ;;  %v3811_v62 = vld [vmem:[%s5759_s3 + $0x84] ss:$16 sps:$4 sm:$0xff]  }
 0x11a   :  { %3054 = vperm.xlu1 %3753, %v2936_v63   ;;  %3049 = vperm.xlu0 %3752, %v2935_v10   ;;  %v2958_v3 = vld [vmem:[%s5760_s5 + $0x118] sm:$0xff]  ;;  %v2957_v8 = vld [vmem:[%s5760_s5 + $0x110] sm:$0xff]  ;;  %v2960_v59 = vld [vmem:[%s5760_s5 + $0x128] sm:$0xff] }
 0x11b   :  { %2306 = vmatpush2.bf16.msra.mxu1 %v1236_v39  ;;  %2595 = vmatpush2.bf16.msra.mxu0 %v1252_v6  ;;  %v4980_v63 = vpop.permute.xlu1 %1348  ;;  %v4982_v10 = vpop.permute.xlu0 %1343  ;;  %v3805_v39 = vld [vmem:[%s5759_s3 + $0x64] ss:$16 sps:$4 sm:$0xff]   ;;  %v3816_v30 = vld [vmem:[%s5759_s3 + $0x88] ss:$16 sps:$4 sm:$0xff]   ;;  %v3819_v49 = vld [vmem:[%s5759_s3 + $0xac] ss:$16 sps:$4 sm:$0xff]  }
 0x11c   :  { %2307 = vmatprep.subr.bf16.mxu1 %v5790_v12  ;;  %2596 = vmatprep.subr.bf16.mxu0 %v5790_v12  ;;  %v2953_v6 = vld [vmem:[%s5760_s5 + $0xf0] sm:$0xff]  ;;  %v2959_v51 = vld [vmem:[%s5760_s5 + $0x120] sm:$0xff]  ;;  %v2962_v56 = vld [vmem:[%s5760_s5 + $0x138] sm:$0xff] }
 0x11d   :  { %v3817_v50 = vld [vmem:[%s5759_s3 + $0xa4] ss:$16 sps:$4 sm:$0xff]   ;;  %v3822_v25 = vld [vmem:[%s5759_s3 + $0xa8] ss:$16 sps:$4 sm:$0xff]   ;;  %v3825_v60 = vld [vmem:[%s5759_s3 + $0xcc] ss:$16 sps:$4 sm:$0xff]  }
 0x11e   :  { %3064 = vperm.xlu1 %3753, %v2938_v57   ;;  %3059 = vperm.xlu0 %3752, %v2937_v21   ;;  %v3813_v57 = vld [vmem:[%s5759_s3 + $0x8c] ss:$16 sps:$4 sm:$0xff]   ;;  %v2961_v9 = vld [vmem:[%s5760_s5 + $0x130] sm:$0xff]  ;;  %v2963_v4 = vld [vmem:[%s5760_s5 + $0x140] sm:$0xff] }
 0x11f   :  { %2308 = vmatpush2.bf16.msra.mxu1 %v1235_v13  ;;  %2597 = vmatpush2.bf16.msra.mxu0 %v1251_v48  ;;  %v5008_v34 = vpop.permute.xlu1 %1358  ;;  %v5010_v46 = vpop.permute.xlu0 %1353  ;;  %v3815_v13 = vld [vmem:[%s5759_s3 + $0x80] ss:$16 sps:$4 sm:$0xff]   ;;  %v3823_v32 = vld [vmem:[%s5759_s3 + $0xc4] ss:$16 sps:$4 sm:$0xff]  }
 0x120   :  { %2309 = vmatprep.subr.bf16.mxu1 %v5790_v12  ;;  %2598 = vmatprep.subr.bf16.mxu0 %v5790_v12 }
 0x122   :  { %3074 = vperm.xlu1 %3753, %v2940_v0   ;;  %3069 = vperm.xlu0 %3752, %v2939_v14  }
 0x123   :  { %2310 = vmatpush2.bf16.msra.mxu1 %v1234_v55  ;;  %2599 = vmatpush2.bf16.msra.mxu0 %v1250_v42  ;;  %v5030_v21 = vpop.permute.xlu1 %1368  ;;  %v5032_v28 = vpop.permute.xlu0 %1363  ;;  %v2964_v55 = vld [vmem:[%s5760_s5 + $0x148] sm:$0xff]  ;;  %v3821_v42 = vld [vmem:[%s5759_s3 + $0xa0] ss:$16 sps:$4 sm:$0xff]  }
 0x124   :  { %2311 = vmatprep.subr.bf16.mxu1 %v5790_v12  ;;  %2600 = vmatprep.subr.bf16.mxu0 %v5790_v12  ;;  %v2943_v12 = vld [vmem:[%s5760_s5 + $0xa0] sm:$0xff] }
 0x126   :  { %3084 = vperm.xlu1 %3753, %v2942_v1   ;;  %3079 = vperm.xlu0 %3752, %v2941_v44   ;;  %v2966_v1 = vld [vmem:[%s5760_s5 + $0x158] sm:$0xff]  ;;  %v2965_v44 = vld [vmem:[%s5760_s5 + $0x150] sm:$0xff] }
 0x127   :  { %2312 = vmatpush2.bf16.msra.mxu1 %v1233_v7  ;;  %2601 = vmatpush2.bf16.msra.mxu0 %v1249_v35  ;;  %v5052_v48 = vpop.permute.xlu1 %1378  ;;  %v5054_v26 = vpop.permute.xlu0 %1373 }
 0x12a   :  { %3094 = vperm.xlu1 %3753, %v2944_v40   ;;  %3089 = vperm.xlu0 %3752, %v2943_v12   ;;  %v3827_v40 = vld [vmem:[%s5759_s3 + $0xc0] ss:$16 sps:$4 sm:$0xff]   ;;  %v3828_v12 = vld [vmem:[%s5759_s3 + $0xc8] ss:$16 sps:$4 sm:$0xff]  }
 0x12b   :  { %2314 = vmatmul.mubr.bf16.vlgmr.msra.gmra.mxu1 %v3787_v38  ;;  %2603 = vmatmul.mubr.bf16.vlgmr.msra.gmra.mxu0 %v3790_v22  ;;  %v5068_v0 = vpop.permute.xlu1 %1388  ;;  %v5070_v14 = vpop.permute.xlu0 %1383  ;;  %v2968_v38 = vld [vmem:[%s5760_s5 + $0x168] sm:$0xff]  ;;  %v2967_v22 = vld [vmem:[%s5760_s5 + $0x160] sm:$0xff] }
 0x12c   :  { %2321 = vmatprep.mubr.bf16.mxu1 %v3793_v19  ;;  %2610 = vmatprep.mubr.bf16.mxu0 %v3795_v27  ;;  %v3829_v19 = vld [vmem:[%s5759_s3 + $0xe4] ss:$16 sps:$4 sm:$0xff]   ;;  %v3831_v27 = vld [vmem:[%s5759_s3 + $0xec] ss:$16 sps:$4 sm:$0xff]  }
 0x12e   :  { %3104 = vperm.xlu1 %3753, %v2946_v45   ;;  %3099 = vperm.xlu0 %3752, %v2945_v33  }
 0x12f   :  { %v5096_v7 = vpop.permute.xlu1 %1398  ;;  %v5098_v35 = vpop.permute.xlu0 %1393 }
 0x132   :  { %3114 = vperm.xlu1 %3753, %v2948_v24   ;;  %3109 = vperm.xlu0 %3752, %v2947_v58   ;;  %v2970_v24 = vld [vmem:[%s5760_s5 + $0x178] sm:$0xff]  ;;  %v2969_v58 = vld [vmem:[%s5760_s5 + $0x170] sm:$0xff] }
 0x133   :  { %2322 = vmatmul.mubr.bf16.gmra.mxu1 %v3797_v23  ;;  %2611 = vmatmul.mubr.bf16.gmra.mxu0 %v3798_v52  ;;  %v5118_v45 = vpop.permute.xlu1 %1408  ;;  %v5120_v33 = vpop.permute.xlu0 %1403  ;;  %v2972_v23 = vld [vmem:[%s5760_s5 + $0x188] sm:$0xff]  ;;  %v2971_v52 = vld [vmem:[%s5760_s5 + $0x180] sm:$0xff] }
 0x134   :  { %2329 = vmatprep.mubr.bf16.mxu1 %v3799_v43  ;;  %2618 = vmatprep.mubr.bf16.mxu0 %v3801_v16  ;;  %v3833_v43 = vld [vmem:[%s5759_s3 + $0xe0] ss:$16 sps:$4 sm:$0xff]   ;;  %v3834_v16 = vld [vmem:[%s5759_s3 + $0xe8] ss:$16 sps:$4 sm:$0xff]  }
 0x136   :  { %3124 = vperm.xlu1 %3753, %v2950_v41   ;;  %3119 = vperm.xlu0 %3752, %v2949_v18  }
 0x137   :  { %v5140_v41 = vpop.permute.xlu1 %1418  ;;  %v5142_v18 = vpop.permute.xlu0 %1413 }
 0x13a   :  { %3134 = vperm.xlu1 %3753, %v2952_v54   ;;  %3129 = vperm.xlu0 %3752, %v2951_v29   ;;  %v3835_v54 = vld [vmem:[%s5759_s3 + $0x104] ss:$16 sps:$4 sm:$0xff]   ;;  %v3837_v29 = vld [vmem:[%s5759_s3 + $0x10c] ss:$16 sps:$4 sm:$0xff]  }
 0x13b   :  { %2330 = vmatmul.mubr.bf16.gmra.mxu1 %v3803_v20  ;;  %2619 = vmatmul.mubr.bf16.gmra.mxu0 %v3804_v53  ;;  %v2974_v20 = vld [vmem:[%s5760_s5 + $0x198] sm:$0xff]  ;;  %v2973_v53 = vld [vmem:[%s5760_s5 + $0x190] sm:$0xff] }
 0x13c   :  { %2337 = vmatprep.mubr.bf16.mxu1 %v3805_v39  ;;  %2626 = vmatprep.mubr.bf16.mxu0 %v3807_v5  ;;  %v5156_v39 = vpop.permute.xlu1 %1428  ;;  %v5158_v5 = vpop.permute.xlu0 %1423 }
 0x13e   :  { %3144 = vperm.xlu1 %3753, %v2954_v36   ;;  %3139 = vperm.xlu0 %3752, %v2953_v6   ;;  %v2976_v36 = vld [vmem:[%s5760_s5 + $0x1a8] sm:$0xff]  ;;  %v2975_v6 = vld [vmem:[%s5760_s5 + $0x1a0] sm:$0xff] }
 0x142   :  { %3154 = vperm.xlu1 %3753, %v2956_v11   ;;  %3149 = vperm.xlu0 %3752, %v2955_v61   ;;  %v3839_v11 = vld [vmem:[%s5759_s3 + $0x100] ss:$16 sps:$4 sm:$0xff]   ;;  %v3840_v61 = vld [vmem:[%s5759_s3 + $0x108] ss:$16 sps:$4 sm:$0xff]  }
 0x143   :  { %2338 = vmatmul.mubr.bf16.gmra.mxu1 %v3809_v31  ;;  %2627 = vmatmul.mubr.bf16.gmra.mxu0 %v3810_v2  ;;  %v3841_v31 = vld [vmem:[%s5759_s3 + $0x124] ss:$16 sps:$4 sm:$0xff]   ;;  %v3843_v2 = vld [vmem:[%s5759_s3 + $0x12c] ss:$16 sps:$4 sm:$0xff]  }
 0x144   :  { %2345 = vmatprep.mubr.bf16.mxu1 %v3811_v62  ;;  %2634 = vmatprep.mubr.bf16.mxu0 %v3813_v57  ;;  %v2978_v62 = vld [vmem:[%s5760_s5 + $0x1b8] sm:$0xff]  ;;  %v2977_v57 = vld [vmem:[%s5760_s5 + $0x1b0] sm:$0xff] }
 0x146   :  { %3164 = vperm.xlu1 %3753, %v2958_v3   ;;  %3159 = vperm.xlu0 %3752, %v2957_v8   ;;  %v5184_v3 = vpop.permute.xlu1 %1438  ;;  %v5186_v8 = vpop.permute.xlu0 %1433 }
 0x14a   :  { %3174 = vperm.xlu1 %3753, %v2960_v59   ;;  %3169 = vperm.xlu0 %3752, %v2959_v51   ;;  %v2980_v59 = vld [vmem:[%s5760_s5 + $0x1c8] sm:$0xff]  ;;  %v2979_v51 = vld [vmem:[%s5760_s5 + $0x1c0] sm:$0xff] }
 0x14b   :  { %2346 = vmatmul.mubr.bf16.gmra.mxu1 %v3815_v13  ;;  %2635 = vmatmul.mubr.bf16.gmra.mxu0 %v3816_v30  ;;  %v3845_v13 = vld [vmem:[%s5759_s3 + $0x120] ss:$16 sps:$4 sm:$0xff]   ;;  %v3846_v30 = vld [vmem:[%s5759_s3 + $0x128] ss:$16 sps:$4 sm:$0xff]  }
 0x14c   :  { %2353 = vmatprep.mubr.bf16.mxu1 %v3817_v50  ;;  %2642 = vmatprep.mubr.bf16.mxu0 %v3819_v49  ;;  %v3847_v50 = vld [vmem:[%s5759_s3 + $0x144] ss:$16 sps:$4 sm:$0xff]   ;;  %v3849_v49 = vld [vmem:[%s5759_s3 + $0x14c] ss:$16 sps:$4 sm:$0xff]  }
 0x14e   :  { %3184 = vperm.xlu1 %3753, %v2962_v56   ;;  %3179 = vperm.xlu0 %3752, %v2961_v9   ;;  %v5206_v56 = vpop.permute.xlu1 %1448  ;;  %v5208_v9 = vpop.permute.xlu0 %1443 }
 0x152   :  { %3194 = vperm.xlu1 %3753, %v2964_v55   ;;  %3189 = vperm.xlu0 %3752, %v2963_v4   ;;  %v2982_v55 = vld [vmem:[%s5760_s5 + $0x1d8] sm:$0xff]  ;;  %v2981_v4 = vld [vmem:[%s5760_s5 + $0x1d0] sm:$0xff] }
 0x153   :  { %2354 = vmatmul.mubr.bf16.gmra.mxu1 %v3821_v42  ;;  %2643 = vmatmul.mubr.bf16.gmra.mxu0 %v3822_v25  ;;  %v2984_v42 = vld [vmem:[%s5760_s5 + $0x1e8] sm:$0xff]  ;;  %v2983_v25 = vld [vmem:[%s5760_s5 + $0x1e0] sm:$0xff] }
 0x154   :  { %2361 = vmatprep.mubr.bf16.mxu1 %v3823_v32  ;;  %2650 = vmatprep.mubr.bf16.mxu0 %v3825_v60  ;;  %v3851_v32 = vld [vmem:[%s5759_s3 + $0x140] ss:$16 sps:$4 sm:$0xff]   ;;  %v3852_v60 = vld [vmem:[%s5759_s3 + $0x148] ss:$16 sps:$4 sm:$0xff]  }
 0x156   :  { %3204 = vperm.xlu1 %3753, %v2966_v1   ;;  %3199 = vperm.xlu0 %3752, %v2965_v44   ;;  %v5228_v1 = vpop.permute.xlu1 %1458  ;;  %v5230_v44 = vpop.permute.xlu0 %1453 }
 0x15a   :  { %3214 = vperm.xlu1 %3753, %v2968_v38   ;;  %3209 = vperm.xlu0 %3752, %v2967_v22   ;;  %v3853_v38 = vld [vmem:[%s5759_s3 + $0x164] ss:$16 sps:$4 sm:$0xff]   ;;  %v3855_v22 = vld [vmem:[%s5759_s3 + $0x16c] ss:$16 sps:$4 sm:$0xff]  }
 0x15b   :  { %2362 = vmatmul.mubr.bf16.gmra.mxu1 %v3827_v40  ;;  %2651 = vmatmul.mubr.bf16.gmra.mxu0 %v3828_v12  ;;  %v2986_v40 = vld [vmem:[%s5760_s5 + $0x1f8] sm:$0xff]  ;;  %v2985_v12 = vld [vmem:[%s5760_s5 + $0x1f0] sm:$0xff] }
 0x15c   :  { %2369 = vmatprep.mubr.bf16.mxu1 %v3829_v19  ;;  %2658 = vmatprep.mubr.bf16.mxu0 %v3831_v27  ;;  %v5244_v19 = vpop.permute.xlu1 %1468  ;;  %v5246_v27 = vpop.permute.xlu0 %1463 }
 0x15e   :  { %3224 = vperm.xlu1 %3753, %v2970_v24   ;;  %3219 = vperm.xlu0 %3752, %v2969_v58   ;;  %v3857_v24 = vld [vmem:[%s5759_s3 + $0x160] ss:$16 sps:$4 sm:$0xff]   ;;  %v3858_v58 = vld [vmem:[%s5759_s3 + $0x168] ss:$16 sps:$4 sm:$0xff]  }
 0x162   :  { %3234 = vperm.xlu1 %3753, %v2972_v23   ;;  %3229 = vperm.xlu0 %3752, %v2971_v52   ;;  %v3859_v23 = vld [vmem:[%s5759_s3 + $0x184] ss:$16 sps:$4 sm:$0xff]   ;;  %v3861_v52 = vld [vmem:[%s5759_s3 + $0x18c] ss:$16 sps:$4 sm:$0xff]  }
 0x163   :  { %2370 = vmatmul.mubr.bf16.gmra.mxu1 %v3833_v43  ;;  %2659 = vmatmul.mubr.bf16.gmra.mxu0 %v3834_v16  ;;  %v3863_v43 = vld [vmem:[%s5759_s3 + $0x180] ss:$16 sps:$4 sm:$0xff]   ;;  %v3864_v16 = vld [vmem:[%s5759_s3 + $0x188] ss:$16 sps:$4 sm:$0xff]  }
 0x164   :  { %2377 = vmatprep.mubr.bf16.mxu1 %v3835_v54  ;;  %2666 = vmatprep.mubr.bf16.mxu0 %v3837_v29  ;;  %v3865_v54 = vld [vmem:[%s5759_s3 + $0x1a4] ss:$16 sps:$4 sm:$0xff]   ;;  %v3867_v29 = vld [vmem:[%s5759_s3 + $0x1ac] ss:$16 sps:$4 sm:$0xff]  }
 0x166   :  { %3244 = vperm.xlu1 %3753, %v2974_v20   ;;  %3239 = vperm.xlu0 %3752, %v2973_v53   ;;  %v5272_v20 = vpop.permute.xlu0 %1473  ;;  %v5274_v53 = vpop.permute.xlu1 %1478 }
 0x16a   :  { %3254 = vperm.xlu1 %3753, %v2976_v36   ;;  %3249 = vperm.xlu0 %3752, %v2975_v6   ;;  %v3869_v36 = vld [vmem:[%s5759_s3 + $0x1a0] ss:$16 sps:$4 sm:$0xff]   ;;  %v3870_v6 = vld [vmem:[%s5759_s3 + $0x1a8] ss:$16 sps:$4 sm:$0xff]  }
 0x16b   :  { %2378 = vmatmul.mubr.bf16.gmra.mxu1 %v3839_v11  ;;  %2667 = vmatmul.mubr.bf16.gmra.mxu0 %v3840_v61  ;;  %v3871_v11 = vld [vmem:[%s5759_s3 + $0x1c4] ss:$16 sps:$4 sm:$0xff]   ;;  %v3873_v61 = vld [vmem:[%s5759_s3 + $0x1cc] ss:$16 sps:$4 sm:$0xff]  }
 0x16c   :  { %2385 = vmatprep.mubr.bf16.mxu1 %v3841_v31  ;;  %2674 = vmatprep.mubr.bf16.mxu0 %v3843_v2  ;;  %v5288_v31 = vpop.permute.xlu0 %1483  ;;  %v5290_v2 = vpop.permute.xlu1 %1488 }
 0x16e   :  { %3264 = vperm.xlu1 %3753, %v2978_v62   ;;  %3259 = vperm.xlu0 %3752, %v2977_v57   ;;  %v3875_v62 = vld [vmem:[%s5759_s3 + $0x1c0] ss:$16 sps:$4 sm:$0xff]   ;;  %v3876_v57 = vld [vmem:[%s5759_s3 + $0x1c8] ss:$16 sps:$4 sm:$0xff]  }
 0x172   :  { %3274 = vperm.xlu1 %3753, %v2980_v59   ;;  %3269 = vperm.xlu0 %3752, %v2979_v51   ;;  %v5298_v59 = vpop.permute.xlu0 %1493  ;;  %v3877_v51 = vld [vmem:[%s5759_s3 + $0x1e4] ss:$16 sps:$4 sm:$0xff]  }
 0x173   :  { %2386 = vmatmul.mubr.bf16.gmra.mxu1 %v3845_v13  ;;  %2675 = vmatmul.mubr.bf16.gmra.mxu0 %v3846_v30  ;;  %v3879_v13 = vld [vmem:[%s5759_s3 + $0x1ec] ss:$16 sps:$4 sm:$0xff]   ;;  %v5306_v30 = vpop.permute.xlu1 %1498 }
 0x174   :  { %2393 = vmatprep.mubr.bf16.mxu1 %v3847_v50  ;;  %2682 = vmatprep.mubr.bf16.mxu0 %v3849_v49  ;;  %v3881_v49 = vld [vmem:[%s5759_s3 + $0x1e0] ss:$16 sps:$4 sm:$0xff]  }
 0x176   :  { %3284 = vperm.xlu1 %3753, %v2982_v55   ;;  %3279 = vperm.xlu0 %3752, %v2981_v4   ;;  %v5308_v50 = vpop.permute.xlu0 %1503  ;;  %v3882_v55 = vld [vmem:[%s5759_s3 + $0x1e8] ss:$16 sps:$4 sm:$0xff]  }
 0x177   :  { %v5316_v4 = vpop.permute.xlu1 %1508 }
 0x17a   :  { %3294 = vperm.xlu1 %3753, %v2984_v42   ;;  %3289 = vperm.xlu0 %3752, %v2983_v25   ;;  %v3883_v42 = vld [vmem:[%s5759_s3 + $0x204] ss:$16 sps:$4 sm:$0xff]   ;;  %v3885_v25 = vld [vmem:[%s5759_s3 + $0x20c] ss:$16 sps:$4 sm:$0xff]  }
 0x17b   :  { %2394 = vmatmul.mubr.bf16.gmra.mxu1 %v3851_v32  ;;  %2683 = vmatmul.mubr.bf16.gmra.mxu0 %v3852_v60  ;;  %v5324_v32 = vpop.permute.xlu0 %1513  ;;  %v5326_v60 = vpop.permute.xlu1 %1518 }
 0x17c   :  { %2401 = vmatprep.mubr.bf16.mxu1 %v3853_v38  ;;  %2690 = vmatprep.mubr.bf16.mxu0 %v3855_v22  ;;  %v3887_v38 = vld [vmem:[%s5759_s3 + $0x200] ss:$16 sps:$4 sm:$0xff]   ;;  %v3888_v22 = vld [vmem:[%s5759_s3 + $0x208] ss:$16 sps:$4 sm:$0xff]  }
 0x17e   :  { %3304 = vperm.xlu1 %3753, %v2986_v40   ;;  %3299 = vperm.xlu0 %3752, %v2985_v12   ;;  %v3889_v40 = vld [vmem:[%s5759_s3 + $0x224] ss:$16 sps:$4 sm:$0xff]   ;;  %v3891_v12 = vld [vmem:[%s5759_s3 + $0x22c] ss:$16 sps:$4 sm:$0xff]  }
 0x183   :  { %2402 = vmatmul.mubr.bf16.gmra.mxu1 %v3857_v24  ;;  %2691 = vmatmul.mubr.bf16.gmra.mxu0 %v3858_v58  ;;  %v5340_v24 = vpop.permute.xlu0 %1523  ;;  %v5342_v58 = vpop.permute.xlu1 %1528 }
 0x184   :  { %2409 = vmatprep.mubr.bf16.mxu1 %v3859_v23  ;;  %2698 = vmatprep.mubr.bf16.mxu0 %v3861_v52  ;;  %v3893_v23 = vld [vmem:[%s5759_s3 + $0x220] ss:$16 sps:$4 sm:$0xff]   ;;  %v3894_v52 = vld [vmem:[%s5759_s3 + $0x228] ss:$16 sps:$4 sm:$0xff]  }
 0x18b   :  { %2410 = vmatmul.mubr.bf16.gmra.mxu1 %v3863_v43  ;;  %2699 = vmatmul.mubr.bf16.gmra.mxu0 %v3864_v16  ;;  %v5350_v43 = vpop.permute.xlu0 %1533  ;;  %v3895_v16 = vld [vmem:[%s5759_s3 + $0x244] ss:$16 sps:$4 sm:$0xff]  }
 0x18c   :  { %2417 = vmatprep.mubr.bf16.mxu1 %v3865_v54  ;;  %2706 = vmatprep.mubr.bf16.mxu0 %v3867_v29  ;;  %v3897_v54 = vld [vmem:[%s5759_s3 + $0x24c] ss:$16 sps:$4 sm:$0xff]   ;;  %v5358_v29 = vpop.permute.xlu1 %1538 }
 0x193   :  { %2418 = vmatmul.mubr.bf16.gmra.mxu1 %v3869_v36  ;;  %2707 = vmatmul.mubr.bf16.gmra.mxu0 %v3870_v6  ;;  %v5360_v36 = vpop.permute.xlu0 %1543  ;;  %v3899_v6 = vld [vmem:[%s5759_s3 + $0x240] ss:$16 sps:$4 sm:$0xff]  }
 0x194   :  { %2425 = vmatprep.mubr.bf16.mxu1 %v3871_v11  ;;  %2714 = vmatprep.mubr.bf16.mxu0 %v3873_v61  ;;  %5816 = vst [vmem:[#allocation23_spill] sm:$0xff] %v5360_v36  ;;  %v3900_v11 = vld [vmem:[%s5759_s3 + $0x248] ss:$16 sps:$4 sm:$0xff]   ;;  %v5368_v61 = vpop.permute.xlu1 %1548 }
 0x195   :  { %5817 = vst [vmem:[#allocation4_spill] sm:$0xff] %v5368_v61 }
 0x19b   :  { %2426 = vmatmul.mubr.bf16.gmra.mxu1 %v3875_v62  ;;  %2715 = vmatmul.mubr.bf16.gmra.mxu0 %v3876_v57  ;;  %v3901_v62 = vld [vmem:[%s5759_s3 + $0x264] ss:$16 sps:$4 sm:$0xff]   ;;  %v3903_v57 = vld [vmem:[%s5759_s3 + $0x26c] ss:$16 sps:$4 sm:$0xff]  }
 0x19c   :  { %2433 = vmatprep.mubr.bf16.mxu1 %v3877_v51  ;;  %2722 = vmatprep.mubr.bf16.mxu0 %v3879_v13  ;;  %v5376_v51 = vpop.permute.xlu0 %1553  ;;  %v5378_v13 = vpop.permute.xlu1 %1558 }
 0x19d   :  { %5818 = vst [vmem:[#allocation26_spill] sm:$0xff] %v5376_v51  ;;  %5819 = vst [vmem:[#allocation21_spill] sm:$0xff] %v5378_v13 }
 0x1a3   :  { %2434 = vmatmul.mubr.bf16.gmra.mxu1 %v3881_v49  ;;  %2723 = vmatmul.mubr.bf16.gmra.mxu0 %v3882_v55  ;;  %v3905_v49 = vld [vmem:[%s5759_s3 + $0x260] ss:$16 sps:$4 sm:$0xff]   ;;  %v3906_v55 = vld [vmem:[%s5759_s3 + $0x268] ss:$16 sps:$4 sm:$0xff]  }
 0x1a4   :  { %2441 = vmatprep.mubr.bf16.mxu1 %v3883_v42  ;;  %2730 = vmatprep.mubr.bf16.mxu0 %v3885_v25  ;;  %v3909_v42 = vld [vmem:[%s5759_s3 + $0x284] ss:$16 sps:$4 sm:$0xff]   ;;  %v3912_v25 = vld [vmem:[%s5759_s3 + $0x28c] ss:$16 sps:$4 sm:$0xff]  }
 0x1ab   :  { %2442 = vmatmul.mubr.bf16.gmra.mxu1 %v3887_v38  ;;  %2731 = vmatmul.mubr.bf16.gmra.mxu0 %v3888_v22  ;;  %v5392_v38 = vpop.permute.xlu0 %1563  ;;  %v5394_v22 = vpop.permute.xlu1 %1568 }
 0x1ac   :  { %2449 = vmatprep.mubr.bf16.mxu1 %v3889_v40  ;;  %2738 = vmatprep.mubr.bf16.mxu0 %v3891_v12  ;;  %5820 = vst [vmem:[#allocation27_spill] sm:$0xff] %v5392_v38  ;;  %5821 = vst [vmem:[#allocation3_spill] sm:$0xff] %v5394_v22  ;;  %v3907_v40 = vld [vmem:[%s5759_s3 + $0x280] ss:$16 sps:$4 sm:$0xff]   ;;  %v3910_v12 = vld [vmem:[%s5759_s3 + $0x288] ss:$16 sps:$4 sm:$0xff]  }
 0x1ad   :  { %v3937_v22 = vld [vmem:[%s5759_s3 + $0x320] ss:$16 sps:$4 sm:$0xff]  }
 0x1b3   :  { %2450 = vmatmul.mubr.bf16.gmra.mxu1 %v3893_v23  ;;  %2739 = vmatmul.mubr.bf16.gmra.mxu0 %v3894_v52  ;;  %v5402_v23 = vpop.permute.xlu0 %1573  ;;  %v3915_v52 = vld [vmem:[%s5759_s3 + $0x2a4] ss:$16 sps:$4 sm:$0xff]  }
 0x1b4   :  { %2457 = vmatprep.mubr.bf16.mxu1 %v3895_v16  ;;  %2746 = vmatprep.mubr.bf16.mxu0 %v3897_v54  ;;  %5822 = vst [vmem:[#allocation24_spill] sm:$0xff] %v5402_v23  ;;  %v3918_v16 = vld [vmem:[%s5759_s3 + $0x2ac] ss:$16 sps:$4 sm:$0xff]   ;;  %v5410_v54 = vpop.permute.xlu1 %1578 }
 0x1b5   :  { %5823 = vst [vmem:[#allocation22_spill] sm:$0xff] %v5410_v54 }
 0x1bb   :  { %2458 = vmatmul.mubr.bf16.gmra.mxu1 %v3899_v6  ;;  %2747 = vmatmul.mubr.bf16.gmra.mxu0 %v3900_v11  ;;  %v5412_v6 = vpop.permute.xlu0 %1583  ;;  %v3913_v11 = vld [vmem:[%s5759_s3 + $0x2a0] ss:$16 sps:$4 sm:$0xff]  }
 0x1bc   :  { %2465 = vmatprep.mubr.bf16.mxu1 %v3901_v62  ;;  %2754 = vmatprep.mubr.bf16.mxu0 %v3903_v57  ;;  %5824 = vst [vmem:[#allocation25_spill] sm:$0xff] %v5412_v6  ;;  %v3916_v62 = vld [vmem:[%s5759_s3 + $0x2a8] ss:$16 sps:$4 sm:$0xff]   ;;  %v5420_v57 = vpop.permute.xlu1 %1588 }
 0x1bd   :  { %5825 = vst [vmem:[#allocation20_spill] sm:$0xff] %v5420_v57 }
 0x1c3   :  { %2466 = vmatmul.mubr.bf16.gmra.mxu1 %v3905_v49  ;;  %2755 = vmatmul.mubr.bf16.gmra.mxu0 %v3906_v55  ;;  %v3921_v49 = vld [vmem:[%s5759_s3 + $0x2c4] ss:$16 sps:$4 sm:$0xff]   ;;  %v3924_v55 = vld [vmem:[%s5759_s3 + $0x2cc] ss:$16 sps:$4 sm:$0xff]  }
 0x1c4   :  { %2473 = vmatprep.mubr.bf16.mxu1 %v3909_v42  ;;  %2762 = vmatprep.mubr.bf16.mxu0 %v3912_v25  ;;  %v5428_v42 = vpop.permute.xlu0 %1593  ;;  %v5430_v25 = vpop.permute.xlu1 %1598 }
 0x1c5   :  { %5826 = vst [vmem:[#allocation19_spill] sm:$0xff] %v5428_v42  ;;  %5827 = vst [vmem:[#allocation18_spill] sm:$0xff] %v5430_v25 }
 0x1cb   :  { %2474 = vmatmul.mubr.bf16.gmra.mxu1 %v3907_v40  ;;  %2763 = vmatmul.mubr.bf16.gmra.mxu0 %v3910_v12  ;;  %v3919_v40 = vld [vmem:[%s5759_s3 + $0x2c0] ss:$16 sps:$4 sm:$0xff]   ;;  %v3922_v12 = vld [vmem:[%s5759_s3 + $0x2c8] ss:$16 sps:$4 sm:$0xff]  }
 0x1cc   :  { %2481 = vmatprep.mubr.bf16.mxu1 %v3915_v52  ;;  %2770 = vmatprep.mubr.bf16.mxu0 %v3918_v16  ;;  %v3927_v52 = vld [vmem:[%s5759_s3 + $0x2e4] ss:$16 sps:$4 sm:$0xff]   ;;  %v3930_v16 = vld [vmem:[%s5759_s3 + $0x2ec] ss:$16 sps:$4 sm:$0xff]  }
 0x1d3   :  { %2482 = vmatmul.mubr.bf16.gmra.mxu1 %v3913_v11  ;;  %2771 = vmatmul.mubr.bf16.gmra.mxu0 %v3916_v62  ;;  %v5444_v11 = vpop.permute.xlu0 %1603  ;;  %v5446_v62 = vpop.permute.xlu1 %1608 }
 0x1d4   :  { %2489 = vmatprep.mubr.bf16.mxu1 %v3921_v49  ;;  %2778 = vmatprep.mubr.bf16.mxu0 %v3924_v55  ;;  %5828 = vst [vmem:[#allocation17_spill] sm:$0xff] %v5444_v11  ;;  %5829 = vst [vmem:[#allocation15_spill] sm:$0xff] %v5446_v62  ;;  %v3925_v49 = vld [vmem:[%s5759_s3 + $0x2e0] ss:$16 sps:$4 sm:$0xff]   ;;  %v3928_v55 = vld [vmem:[%s5759_s3 + $0x2e8] ss:$16 sps:$4 sm:$0xff]  }
 0x1d5   :  { %v3933_v11 = vld [vmem:[%s5759_s3 + $0x304] ss:$16 sps:$4 sm:$0xff]  }
 0x1d7   :  { %v5454_v25 = vpop.permute.xlu0 %1613 }
 0x1d8   :  { %5830 = vst [vmem:[#allocation16_spill] sm:$0xff] %v5454_v25  ;;  %v3934_v25 = vld [vmem:[%s5759_s3 + $0x308] ss:$16 sps:$4 sm:$0xff]  }
 0x1db   :  { %2490 = vmatmul.mubr.bf16.gmra.mxu1 %v3919_v40  ;;  %2779 = vmatmul.mubr.bf16.gmra.mxu0 %v3922_v12  ;;  %v3936_v40 = vld [vmem:[%s5759_s3 + $0x30c] ss:$16 sps:$4 sm:$0xff]   ;;  %v5462_v12 = vpop.permute.xlu1 %1618 }
 0x1dc   :  { %2497 = vmatprep.mubr.bf16.mxu1 %v3927_v52  ;;  %2786 = vmatprep.mubr.bf16.mxu0 %v3930_v16  ;;  %5831 = vst [vmem:[#allocation13_spill] sm:$0xff] %v5462_v12  ;;  %v5464_v52 = vpop.permute.xlu0 %1623  ;;  %v3931_v16 = vld [vmem:[%s5759_s3 + $0x300] ss:$16 sps:$4 sm:$0xff]   ;;  %v3939_v12 = vld [vmem:[%s5759_s3 + $0x324] ss:$16 sps:$4 sm:$0xff]  }
 0x1dd   :  { %5832 = vst [vmem:[#allocation14_spill] sm:$0xff] %v5464_v52 }
 0x1df   :  { %v5472_v62 = vpop.permute.xlu1 %1628 }
 0x1e0   :  { %5833 = vst [vmem:[#allocation11_spill] sm:$0xff] %v5472_v62 }
 0x1e3   :  { %2498 = vmatmul.mubr.bf16.gmra.mxu1 %v3925_v49  ;;  %2787 = vmatmul.mubr.bf16.gmra.mxu0 %v3928_v55  ;;  %v5483_v57 = vpop.permute.xlu1 %1638 }
 0x1e4   :  { %2505 = vmatprep.mubr.bf16.mxu1 %v3933_v11  ;;  %2794 = vmatprep.mubr.bf16.mxu0 %v3936_v40  ;;  %v3942_v11 = vld [vmem:[%s5759_s3 + $0x32c] ss:$16 sps:$4 sm:$0xff]   ;;  %v5480_v40 = vpop.permute.xlu0 %1633  ;;  %5835 = vst [vmem:[#allocation9_spill] sm:$0xff] %v5483_v57 }
 0x1e5   :  { %5834 = vst [vmem:[#allocation12_spill] sm:$0xff] %v5480_v40 }
 0x1e7   :  { %v2995_v40 = vpop.permute.xlu1 %2994 }
 0x1eb   :  { %v2315_v49 = vpop.f32.mrf.mxu1  ;;  %2506 = vmatmul.mubr.bf16.gmra.mxu1 %v3931_v16  ;;  %v2604_v55 = vpop.f32.mrf.mxu0  ;;  %2795 = vmatmul.mubr.bf16.gmra.mxu0 %v3934_v25  ;;  %v3940_v25 = vld [vmem:[%s5759_s3 + $0x328] ss:$16 sps:$4 sm:$0xff]  }
 0x1ec   :  { %v2316_v52 = vadd.f32 %v2315_v49, %v4944_v37  ;;  %2513 = vmatprep.mubr.bf16.mxu1 %v3939_v12  ;;  %2802 = vmatprep.mubr.bf16.mxu0 %v3942_v11  ;;  %v3945_v37 = vld [vmem:[%s5759_s3 + $0x344] ss:$16 sps:$4 sm:$0xff]  }
 0x1ed   :  { %v2317_v42 = vpop.f32.mrf.mxu1  ;;  %v2606_v62 = vpop.f32.mrf.mxu0 }
 0x1ee   :  { %v2605_v6 = vadd.f32 %v2604_v55, %v2316_v52  ;;  %v3948_v42 = vld [vmem:[%s5759_s3 + $0x34c] ss:$16 sps:$4 sm:$0xff]   ;;  %v2990_v52 = vpop.permute.xlu0 %2989 }
 0x1ef   :  { %v2318_v54 = vpop.f32.mrf.mxu1  ;;  %v2607_v23 = vpop.f32.mrf.mxu0 }
 0x1f0   :  { %v2319_v16 = vadd.f32 %v2318_v54, %v4942_v47  ;;  %v2859_v11 = vmax.f32 %v2605_v6, 0.0 }
 0x1f1   :  { %v2320_v62 = vpop.f32.mrf.mxu1  ;;  %v2609_v12 = vpop.f32.mrf.mxu0 }
 0x1f2   :  { %v2608_v49 = vadd.f32 %v2607_v23, %v2319_v16  ;;  %v3307_v51 = vmul.f32 %v2990_v52, %v2859_v11  ;;  %v3943_v23 = vld [vmem:[%s5759_s3 + $0x340] ss:$16 sps:$4 sm:$0xff]   ;;  %v3000_v6 = vpop.permute.xlu0 %2999 }
 0x1f3   :  { %v2323_v55 = vpop.f32.mrf.mxu1  ;;  %2514 = vmatmul.mubr.bf16.gmra.mxu1 %v3937_v22  ;;  %v2612_v57 = vpop.f32.mrf.mxu0  ;;  %2803 = vmatmul.mubr.bf16.gmra.mxu0 %v3940_v25  ;;  %v3946_v22 = vld [vmem:[%s5759_s3 + $0x348] ss:$16 sps:$4 sm:$0xff]  }
 0x1f4   :  { %v2860_v38 = vmax.f32 %v2608_v49, 0.0  ;;  %v2324_v47 = vadd.f32 %v2323_v55, %v4966_v15  ;;  %2521 = vmatprep.mubr.bf16.mxu1 %v3945_v37  ;;  %2810 = vmatprep.mubr.bf16.mxu0 %v3948_v42 }
 0x1f5   :  { %v2325_v54 = vpop.f32.mrf.mxu1  ;;  %v2614_v13 = vpop.f32.mrf.mxu0 }
 0x1f6   :  { %v3308_v61 = vmul.f32 %v2995_v40, %v2860_v38  ;;  %v2613_v36 = vadd.f32 %v2612_v57, %v2324_v47  ;;  %v3951_v13 = vld [vmem:[%s5759_s3 + $0x364] ss:$16 sps:$4 sm:$0xff]   ;;  %v3954_v38 = vld [vmem:[%s5759_s3 + $0x36c] ss:$16 sps:$4 sm:$0xff]  }
 0x1f7   :  { %v2326_v62 = vpop.f32.mrf.mxu1  ;;  %v2615_v12 = vpop.f32.mrf.mxu0 }
 0x1f8   :  { %v3371_v25 = vadd.f32 %v3308_v61, %v3307_v51  ;;  %v2861_v15 = vmax.f32 %v2613_v36, 0.0  ;;  %v2327_v16 = vadd.f32 %v2326_v62, %v4964_v17  ;;  %v3005_v61 = vpop.permute.xlu1 %3004 }
 0x1f9   :  { %v2328_v57 = vpop.f32.mrf.mxu1  ;;  %v2617_v40 = vpop.f32.mrf.mxu0 }
 0x1fa   :  { %v3309_v37 = vmul.f32 %v3000_v6, %v2861_v15  ;;  %v2616_v42 = vadd.f32 %v2615_v12, %v2327_v16  ;;  %v3949_v12 = vld [vmem:[%s5759_s3 + $0x360] ss:$16 sps:$4 sm:$0xff]   ;;  %v3957_v15 = vld [vmem:[%s5759_s3 + $0x384] ss:$16 sps:$4 sm:$0xff]   ;;  %v3960_v16 = vld [vmem:[%s5759_s3 + $0x38c] ss:$16 sps:$4 sm:$0xff]  }
 0x1fb   :  { %v2331_v52 = vpop.f32.mrf.mxu1  ;;  %2522 = vmatmul.mubr.bf16.gmra.mxu1 %v3943_v23  ;;  %v2620_v11 = vpop.f32.mrf.mxu0  ;;  %2811 = vmatmul.mubr.bf16.gmra.mxu0 %v3946_v22  ;;  %v3952_v23 = vld [vmem:[%s5759_s3 + $0x368] ss:$16 sps:$4 sm:$0xff]  }
 0x1fc   :  { %v3372_v36 = vadd.f32 %v3371_v25, %v3309_v37  ;;  %v2862_v51 = vmax.f32 %v2616_v42, 0.0  ;;  %v2332_v17 = vadd.f32 %v2331_v52, %v4982_v10  ;;  %2529 = vmatprep.mubr.bf16.mxu1 %v3951_v13  ;;  %2818 = vmatprep.mubr.bf16.mxu0 %v3954_v38  ;;  %v3010_v22 = vpop.permute.xlu0 %3009 }
 0x1fd   :  { %v2333_v49 = vpop.f32.mrf.mxu1  ;;  %v2622_v55 = vpop.f32.mrf.mxu0 }
 0x1fe   :  { %v3310_v47 = vmul.f32 %v3005_v61, %v2862_v51  ;;  %v2621_v54 = vadd.f32 %v2620_v11, %v2332_v17  ;;  %v3015_v11 = vpop.permute.xlu1 %3014 }
 0x1ff   :  { %v2334_v62 = vpop.f32.mrf.mxu1  ;;  %v2623_v57 = vpop.f32.mrf.mxu0 }
 0x200   :  { %v3373_v6 = vadd.f32 %v3372_v36, %v3310_v47  ;;  %v2863_v25 = vmax.f32 %v2621_v54, 0.0  ;;  %v2335_v10 = vadd.f32 %v2334_v62, %v4980_v63  ;;  %v3955_v62 = vld [vmem:[%s5759_s3 + $0x380] ss:$16 sps:$4 sm:$0xff]  }
 0x201   :  { %v2336_v13 = vpop.f32.mrf.mxu1  ;;  %v2625_v38 = vpop.f32.mrf.mxu0 }
 0x202   :  { %v3311_v40 = vmul.f32 %v3010_v22, %v2863_v25  ;;  %v2624_v37 = vadd.f32 %v2623_v57, %v2335_v10  ;;  %v3958_v57 = vld [vmem:[%s5759_s3 + $0x388] ss:$16 sps:$4 sm:$0xff]   ;;  %v3966_v25 = vld [vmem:[%s5759_s3 + $0x3ac] ss:$16 sps:$4 sm:$0xff]  }
 0x203   :  { %v2339_v42 = vpop.f32.mrf.mxu1  ;;  %2530 = vmatmul.mubr.bf16.gmra.mxu1 %v3949_v12  ;;  %v2628_v52 = vpop.f32.mrf.mxu0  ;;  %2819 = vmatmul.mubr.bf16.gmra.mxu0 %v3952_v23 }
 0x204   :  { %v3374_v61 = vadd.f32 %v3373_v6, %v3311_v40  ;;  %v2864_v36 = vmax.f32 %v2624_v37, 0.0  ;;  %v2340_v63 = vadd.f32 %v2339_v42, %v5010_v46  ;;  %2537 = vmatprep.mubr.bf16.mxu1 %v3957_v15  ;;  %2826 = vmatprep.mubr.bf16.mxu0 %v3960_v16  ;;  %v3020_v12 = vpop.permute.xlu0 %3019  ;;  %v3963_v6 = vld [vmem:[%s5759_s3 + $0x3a4] ss:$16 sps:$4 sm:$0xff]   ;;  %v3025_v37 = vpop.permute.xlu1 %3024 }
 0x205   :  { %v2341_v51 = vpop.f32.mrf.mxu1  ;;  %v2630_v17 = vpop.f32.mrf.mxu0 }
 0x206   :  { %v3312_v49 = vmul.f32 %v3015_v11, %v2864_v36  ;;  %v2629_v55 = vadd.f32 %v2628_v52, %v2340_v63 }
 0x207   :  { %v2342_v47 = vpop.f32.mrf.mxu1  ;;  %v2631_v54 = vpop.f32.mrf.mxu0 }
 0x208   :  { %v3375_v23 = vadd.f32 %v3374_v61, %v3312_v49  ;;  %v2865_v22 = vmax.f32 %v2629_v55, 0.0  ;;  %v2343_v46 = vadd.f32 %v2342_v47, %v5008_v34  ;;  %v3961_v49 = vld [vmem:[%s5759_s3 + $0x3a0] ss:$16 sps:$4 sm:$0xff]   ;;  %v3964_v55 = vld [vmem:[%s5759_s3 + $0x3a8] ss:$16 sps:$4 sm:$0xff]   ;;  %v3030_v47 = vpop.permute.xlu0 %3029 }
 0x209   :  { %v2344_v10 = vpop.f32.mrf.mxu1  ;;  %v2633_v15 = vpop.f32.mrf.mxu0 }
 0x20a   :  { %v3313_v16 = vmul.f32 %v3020_v12, %v2865_v22  ;;  %v2632_v13 = vadd.f32 %v2631_v54, %v2343_v46  ;;  %v3972_v12 = vld [vmem:[%s5759_s3 + $0x3cc] ss:$16 sps:$4 sm:$0xff]   ;;  %v3035_v15 = vpop.permute.xlu1 %3034 }
 0x20b   :  { %v2347_v38 = vpop.f32.mrf.mxu1  ;;  %2538 = vmatmul.mubr.bf16.gmra.mxu1 %v3955_v62  ;;  %v2636_v40 = vpop.f32.mrf.mxu0  ;;  %2827 = vmatmul.mubr.bf16.gmra.mxu0 %v3958_v57  ;;  %v3969_v57 = vld [vmem:[%s5759_s3 + $0x3c4] ss:$16 sps:$4 sm:$0xff]  }
 0x20c   :  { %v3376_v42 = vadd.f32 %v3375_v23, %v3313_v16  ;;  %v2866_v52 = vmax.f32 %v2632_v13, 0.0  ;;  %v2348_v34 = vadd.f32 %v2347_v38, %v5032_v28  ;;  %2545 = vmatprep.mubr.bf16.mxu1 %v3963_v6  ;;  %2834 = vmatprep.mubr.bf16.mxu0 %v3966_v25 }
 0x20d   :  { %v2349_v11 = vpop.f32.mrf.mxu1  ;;  %v2638_v61 = vpop.f32.mrf.mxu0 }
 0x20e   :  { %v3314_v36 = vmul.f32 %v3025_v37, %v2866_v52  ;;  %v2637_v63 = vadd.f32 %v2636_v40, %v2348_v34  ;;  %v3967_v11 = vld [vmem:[%s5759_s3 + $0x3c0] ss:$16 sps:$4 sm:$0xff]   ;;  %v3970_v61 = vld [vmem:[%s5759_s3 + $0x3c8] ss:$16 sps:$4 sm:$0xff]  }
 0x20f   :  { %v2350_v51 = vpop.f32.mrf.mxu1  ;;  %v2639_v17 = vpop.f32.mrf.mxu0 }
 0x210   :  { %v3377_v54 = vadd.f32 %v3376_v42, %v3314_v36  ;;  %v2867_v62 = vmax.f32 %v2637_v63, 0.0  ;;  %v2351_v28 = vadd.f32 %v2350_v51, %v5030_v21  ;;  %v3040_v36 = vpop.permute.xlu0 %3039 }
 0x211   :  { %v2352_v23 = vpop.f32.mrf.mxu1  ;;  %v2641_v22 = vpop.f32.mrf.mxu0 }
 0x212   :  { %v3315_v46 = vmul.f32 %v3030_v47, %v2867_v62  ;;  %v2640_v6 = vadd.f32 %v2639_v17, %v2351_v28  ;;  %v3975_v17 = vld [vmem:[%s5759_s3 + $0x3e4] ss:$16 sps:$4 sm:$0xff]  }
 0x213   :  { %v2355_v25 = vpop.f32.mrf.mxu1  ;;  %2546 = vmatmul.mubr.bf16.gmra.mxu1 %v3961_v49  ;;  %v2644_v10 = vpop.f32.mrf.mxu0  ;;  %2835 = vmatmul.mubr.bf16.gmra.mxu0 %v3964_v55  ;;  %v3978_v49 = vld [vmem:[%s5759_s3 + $0x3ec] ss:$16 sps:$4 sm:$0xff]  }
 0x214   :  { %v3378_v16 = vadd.f32 %v3377_v54, %v3315_v46  ;;  %v2868_v13 = vmax.f32 %v2640_v6, 0.0  ;;  %v2356_v21 = vadd.f32 %v2355_v25, %v5054_v26  ;;  %2553 = vmatprep.mubr.bf16.mxu1 %v3969_v57  ;;  %2842 = vmatprep.mubr.bf16.mxu0 %v3972_v12  ;;  %v3045_v12 = vpop.permute.xlu1 %3044 }
 0x215   :  { %v2357_v38 = vpop.f32.mrf.mxu1  ;;  %v2646_v40 = vpop.f32.mrf.mxu0 }
 0x216   :  { %v3316_v37 = vmul.f32 %v3035_v15, %v2868_v13  ;;  %v2645_v42 = vadd.f32 %v2644_v10, %v2356_v21  ;;  %v3973_v13 = vld [vmem:[%s5759_s3 + $0x3e0] ss:$16 sps:$4 sm:$0xff]   ;;  %v3976_v21 = vld [vmem:[%s5759_s3 + $0x3e8] ss:$16 sps:$4 sm:$0xff]   ;;  %v3050_v38 = vpop.permute.xlu0 %3049 }
 0x217   :  { %v2358_v52 = vpop.f32.mrf.mxu1  ;;  %v2647_v34 = vpop.f32.mrf.mxu0 }
 0x218   :  { %v3379_v63 = vadd.f32 %v3378_v16, %v3316_v37  ;;  %v2869_v51 = vmax.f32 %v2645_v42, 0.0  ;;  %v2359_v26 = vadd.f32 %v2358_v52, %v5052_v48 }
 0x219   :  { %v2360_v55 = vpop.f32.mrf.mxu1  ;;  %v2649_v47 = vpop.f32.mrf.mxu0 }
 0x21a   :  { %v3317_v54 = vmul.f32 %v3040_v36, %v2869_v51  ;;  %v2648_v62 = vadd.f32 %v2647_v34, %v2359_v26 }
 0x21b   :  { %v2363_v28 = vpop.f32.mrf.mxu1  ;;  %2554 = vmatmul.mubr.bf16.gmra.mxu1 %v3967_v11  ;;  %v2652_v57 = vpop.f32.mrf.mxu0  ;;  %2843 = vmatmul.mubr.bf16.gmra.mxu0 %v3970_v61 }
 0x21c   :  { %v3380_v23 = vadd.f32 %v3379_v63, %v3317_v54  ;;  %v2870_v22 = vmax.f32 %v2648_v62, 0.0  ;;  %v2364_v48 = vadd.f32 %v2363_v28, %v5070_v14  ;;  %2561 = vmatprep.mubr.bf16.mxu1 %v3975_v17  ;;  %2850 = vmatprep.mubr.bf16.mxu0 %v3978_v49  ;;  %v3055_v63 = vpop.permute.xlu1 %3054 }
 0x21d   :  { %v2365_v46 = vpop.f32.mrf.mxu1  ;;  %v2654_v6 = vpop.f32.mrf.mxu0 }
 0x21e   :  { %v3318_v25 = vmul.f32 %v3045_v12, %v2870_v22  ;;  %v2653_v10 = vadd.f32 %v2652_v57, %v2364_v48 }
 0x21f   :  { %v2366_v15 = vpop.f32.mrf.mxu1  ;;  %v2655_v16 = vpop.f32.mrf.mxu0 }
 0x220   :  { %v3381_v40 = vadd.f32 %v3380_v23, %v3318_v25  ;;  %v2871_v37 = vmax.f32 %v2653_v10, 0.0  ;;  %v2367_v14 = vadd.f32 %v2366_v15, %v5068_v0  ;;  %v3060_v0 = vpop.permute.xlu0 %3059  ;;  %v3065_v15 = vpop.permute.xlu1 %3064 }
 0x221   :  { %v2368_v42 = vpop.f32.mrf.mxu1  ;;  %v2657_v52 = vpop.f32.mrf.mxu0 }
 0x222   :  { %v3319_v34 = vmul.f32 %v3050_v38, %v2871_v37  ;;  %v2656_v11 = vadd.f32 %v2655_v16, %v2367_v14 }
 0x223   :  { %v2371_v61 = vpop.f32.mrf.mxu1  ;;  %2562 = vmatmul.mubr.bf16.gmra.mxu1 %v3973_v13  ;;  %v2660_v36 = vpop.f32.mrf.mxu0  ;;  %2851 = vmatmul.mubr.bf16.gmra.mxu0 %v3976_v21 }
 0x224   :  { %v3382_v51 = vadd.f32 %v3381_v40, %v3319_v34  ;;  %v2872_v26 = vmax.f32 %v2656_v11, 0.0  ;;  %v2372_v17 = vadd.f32 %v2371_v61, %v5098_v35  ;;  %v3070_v52 = vpop.permute.xlu0 %3069 }
 0x225   :  { %v2373_v49 = vpop.f32.mrf.mxu1  ;;  %v2662_v55 = vpop.f32.mrf.mxu0 }
 0x226   :  { %v3320_v47 = vmul.f32 %v3055_v63, %v2872_v26  ;;  %v2661_v54 = vadd.f32 %v2660_v36, %v2372_v17  ;;  %v3075_v49 = vpop.permute.xlu1 %3074 }
 0x227   :  { %v2374_v62 = vpop.f32.mrf.mxu1  ;;  %v2663_v28 = vpop.f32.mrf.mxu0 }
 0x228   :  { %v3383_v57 = vadd.f32 %v3382_v51, %v3320_v47  ;;  %v2873_v12 = vmax.f32 %v2661_v54, 0.0  ;;  %v2375_v23 = vadd.f32 %v2374_v62, %v5096_v7 }
 0x229   :  { %v2376_v22 = vpop.f32.mrf.mxu1  ;;  %v2665_v48 = vpop.f32.mrf.mxu0 }
 0x22a   :  { %v3321_v46 = vmul.f32 %v3060_v0, %v2873_v12  ;;  %v2664_v6 = vadd.f32 %v2663_v28, %v2375_v23  ;;  %v3080_v23 = vpop.permute.xlu0 %3079 }
 0x22b   :  { %v2379_v25 = vpop.f32.mrf.mxu1  ;;  %v2668_v10 = vpop.f32.mrf.mxu0 }
 0x22c   :  { %v3384_v16 = vadd.f32 %v3383_v57, %v3321_v46  ;;  %v2874_v35 = vmax.f32 %v2664_v6, 0.0  ;;  %v2380_v13 = vadd.f32 %v2379_v25, %v5120_v33 }
 0x22d   :  { %v2381_v21 = vpop.f32.mrf.mxu1  ;;  %v2670_v38 = vpop.f32.mrf.mxu0 }
 0x22e   :  { %v3322_v40 = vmul.f32 %v3065_v15, %v2874_v35  ;;  %v2669_v37 = vadd.f32 %v2668_v10, %v2380_v13  ;;  %v3085_v35 = vpop.permute.xlu1 %3084 }
 0x22f   :  { %v2382_v14 = vpop.f32.mrf.mxu1  ;;  %v2671_v42 = vpop.f32.mrf.mxu0 }
 0x230   :  { %v3385_v34 = vadd.f32 %v3384_v16, %v3322_v40  ;;  %v2875_v7 = vmax.f32 %v2669_v37, 0.0  ;;  %v2383_v11 = vadd.f32 %v2382_v14, %v5118_v45 }
 0x231   :  { %v2384_v61 = vpop.f32.mrf.mxu1  ;;  %v2673_v36 = vpop.f32.mrf.mxu0 }
 0x232   :  { %v3323_v63 = vmul.f32 %v3070_v52, %v2875_v7  ;;  %v2672_v51 = vadd.f32 %v2671_v42, %v2383_v11 }
 0x233   :  { %v2387_v26 = vpop.f32.mrf.mxu1  ;;  %v2676_v17 = vpop.f32.mrf.mxu0 }
 0x234   :  { %v3386_v55 = vadd.f32 %v3385_v34, %v3323_v63  ;;  %v2876_v33 = vmax.f32 %v2672_v51, 0.0  ;;  %v2388_v47 = vadd.f32 %v2387_v26, %v5142_v18  ;;  %v3090_v34 = vpop.permute.xlu0 %3089 }
 0x235   :  { %v2389_v54 = vpop.f32.mrf.mxu1  ;;  %v2678_v62 = vpop.f32.mrf.mxu0 }
 0x236   :  { %v3324_v28 = vmul.f32 %v3075_v49, %v2876_v33  ;;  %v2677_v0 = vadd.f32 %v2676_v17, %v2388_v47  ;;  %v3095_v49 = vpop.permute.xlu1 %3094 }
 0x237   :  { %v2390_v57 = vpop.f32.mrf.mxu1  ;;  %v2679_v12 = vpop.f32.mrf.mxu0 }
 0x238   :  { %v3387_v22 = vadd.f32 %v3386_v55, %v3324_v28  ;;  %v2877_v45 = vmax.f32 %v2677_v0, 0.0  ;;  %v2391_v48 = vadd.f32 %v2390_v57, %v5140_v41 }
 0x239   :  { %v2392_v46 = vpop.f32.mrf.mxu1  ;;  %v2681_v6 = vpop.f32.mrf.mxu0 }
 0x23a   :  { %v3325_v25 = vmul.f32 %v3080_v23, %v2877_v45  ;;  %v2680_v10 = vadd.f32 %v2679_v12, %v2391_v48  ;;  %v3100_v12 = vpop.permute.xlu0 %3099 }
 0x23b   :  { %v2395_v15 = vpop.f32.mrf.mxu1  ;;  %v2684_v16 = vpop.f32.mrf.mxu0 }
 0x23c   :  { %v3388_v13 = vadd.f32 %v3387_v22, %v3325_v25  ;;  %v2878_v18 = vmax.f32 %v2680_v10, 0.0  ;;  %v2396_v21 = vadd.f32 %v2395_v15, %v5158_v5  ;;  %v3105_v15 = vpop.permute.xlu1 %3104 }
 0x23d   :  { %v2397_v38 = vpop.f32.mrf.mxu1  ;;  %v2686_v40 = vpop.f32.mrf.mxu0 }
 0x23e   :  { %v3326_v37 = vmul.f32 %v3085_v35, %v2878_v18  ;;  %v2685_v14 = vadd.f32 %v2684_v16, %v2396_v21 }
 0x23f   :  { %v2398_v42 = vpop.f32.mrf.mxu1  ;;  %v2687_v52 = vpop.f32.mrf.mxu0 }
 0x240   :  { %v3389_v7 = vadd.f32 %v3388_v13, %v3326_v37  ;;  %v2879_v41 = vmax.f32 %v2685_v14, 0.0  ;;  %v2399_v11 = vadd.f32 %v2398_v42, %v5156_v39  ;;  %v3110_v14 = vpop.permute.xlu0 %3109 }
 0x241   :  { %v2400_v61 = vpop.f32.mrf.mxu1  ;;  %v2689_v36 = vpop.f32.mrf.mxu0 }
 0x242   :  { %v3327_v63 = vmul.f32 %v3090_v34, %v2879_v41  ;;  %v2688_v51 = vadd.f32 %v2687_v52, %v2399_v11 }
 0x243   :  { %v2403_v26 = vpop.f32.mrf.mxu1  ;;  %v2692_v17 = vpop.f32.mrf.mxu0 }
 0x244   :  { %v3390_v55 = vadd.f32 %v3389_v7, %v3327_v63  ;;  %v2880_v5 = vmax.f32 %v2688_v51, 0.0  ;;  %v2404_v33 = vadd.f32 %v2403_v26, %v5186_v8  ;;  %v3115_v63 = vpop.permute.xlu1 %3114 }
 0x245   :  { %v2405_v47 = vpop.f32.mrf.mxu1  ;;  %v2694_v54 = vpop.f32.mrf.mxu0 }
 0x246   :  { %v3328_v62 = vmul.f32 %v3095_v49, %v2880_v5  ;;  %v2693_v28 = vadd.f32 %v2692_v17, %v2404_v33  ;;  %v3120_v54 = vpop.permute.xlu0 %3119 }
 0x247   :  { %v2406_v0 = vpop.f32.mrf.mxu1  ;;  %v2695_v57 = vpop.f32.mrf.mxu0 }
 0x248   :  { %v3391_v23 = vadd.f32 %v3390_v55, %v3328_v62  ;;  %v2881_v39 = vmax.f32 %v2693_v28, 0.0  ;;  %v2407_v22 = vadd.f32 %v2406_v0, %v5184_v3 }
 0x249   :  { %v2408_v45 = vpop.f32.mrf.mxu1  ;;  %v2697_v48 = vpop.f32.mrf.mxu0 }
 0x24a   :  { %v3329_v46 = vmul.f32 %v3100_v12, %v2881_v39  ;;  %v2696_v6 = vadd.f32 %v2695_v57, %v2407_v22  ;;  %v3125_v45 = vpop.permute.xlu1 %3124 }
 0x24b   :  { %v2411_v25 = vpop.f32.mrf.mxu1  ;;  %v2700_v10 = vpop.f32.mrf.mxu0 }
 0x24c   :  { %v3392_v16 = vadd.f32 %v3391_v23, %v3329_v46  ;;  %v2882_v8 = vmax.f32 %v2696_v6, 0.0  ;;  %v2412_v35 = vadd.f32 %v2411_v25, %v5208_v9 }
 0x24d   :  { %v2413_v13 = vpop.f32.mrf.mxu1  ;;  %v2702_v18 = vpop.f32.mrf.mxu0 }
 0x24e   :  { %v3330_v21 = vmul.f32 %v3105_v15, %v2882_v8  ;;  %v2701_v38 = vadd.f32 %v2700_v10, %v2412_v35  ;;  %v3130_v35 = vpop.permute.xlu0 %3129 }
 0x24f   :  { %v2414_v40 = vpop.f32.mrf.mxu1  ;;  %v2703_v37 = vpop.f32.mrf.mxu0 }
 0x250   :  { %v3393_v42 = vadd.f32 %v3392_v16, %v3330_v21  ;;  %v2883_v3 = vmax.f32 %v2701_v38, 0.0  ;;  %v2415_v52 = vadd.f32 %v2414_v40, %v5206_v56 }
 0x251   :  { %v2416_v34 = vpop.f32.mrf.mxu1  ;;  %v2705_v7 = vpop.f32.mrf.mxu0 }
 0x252   :  { %v3331_v41 = vmul.f32 %v3110_v14, %v2883_v3  ;;  %v2704_v11 = vadd.f32 %v2703_v37, %v2415_v52  ;;  %v3135_v3 = vpop.permute.xlu1 %3134 }
 0x253   :  { %v2419_v61 = vpop.f32.mrf.mxu1  ;;  %v2708_v36 = vpop.f32.mrf.mxu0 }
 0x254   :  { %v3394_v51 = vadd.f32 %v3393_v42, %v3331_v41  ;;  %v2884_v9 = vmax.f32 %v2704_v11, 0.0  ;;  %v2420_v26 = vadd.f32 %v2419_v61, %v5230_v44 }
 0x255   :  { %v2421_v17 = vpop.f32.mrf.mxu1  ;;  %v2710_v49 = vpop.f32.mrf.mxu0 }
 0x256   :  { %v3332_v55 = vmul.f32 %v3115_v63, %v2884_v9  ;;  %v2709_v5 = vadd.f32 %v2708_v36, %v2420_v26 }
 0x257   :  { %v2422_v33 = vpop.f32.mrf.mxu1  ;;  %v2711_v47 = vpop.f32.mrf.mxu0 }
 0x258   :  { %v3395_v62 = vadd.f32 %v3394_v51, %v3332_v55  ;;  %v2885_v56 = vmax.f32 %v2709_v5, 0.0  ;;  %v2423_v28 = vadd.f32 %v2422_v33, %v5228_v1  ;;  %v3140_v51 = vpop.permute.xlu0 %3139 }
 0x259   :  { %v2424_v0 = vpop.f32.mrf.mxu1  ;;  %v2713_v57 = vpop.f32.mrf.mxu0 }
 0x25a   :  { %v3333_v12 = vmul.f32 %v3120_v54, %v2885_v56  ;;  %v2712_v23 = vadd.f32 %v2711_v47, %v2423_v28  ;;  %v3145_v54 = vpop.permute.xlu1 %3144 }
 0x25b   :  { %v2427_v39 = vpop.f32.mrf.mxu1  ;;  %v2716_v22 = vpop.f32.mrf.mxu0 }
 0x25c   :  { %v3396_v48 = vadd.f32 %v3395_v62, %v3333_v12  ;;  %v2886_v44 = vmax.f32 %v2712_v23, 0.0  ;;  %v2428_v46 = vadd.f32 %v2427_v39, %v5246_v27 }
 0x25d   :  { %v2429_v6 = vpop.f32.mrf.mxu1  ;;  %v2718_v25 = vpop.f32.mrf.mxu0 }
 0x25e   :  { %v3334_v10 = vmul.f32 %v3125_v45, %v2886_v44  ;;  %v2717_v15 = vadd.f32 %v2716_v22, %v2428_v46  ;;  %v3150_v22 = vpop.permute.xlu0 %3149 }
 0x25f   :  { %v2430_v16 = vpop.f32.mrf.mxu1  ;;  %v2719_v8 = vpop.f32.mrf.mxu0 }
 0x260   :  { %v3397_v13 = vadd.f32 %v3396_v48, %v3334_v10  ;;  %v2887_v1 = vmax.f32 %v2717_v15, 0.0  ;;  %v2431_v18 = vadd.f32 %v2430_v16, %v5244_v19 }
 0x261   :  { %v2432_v21 = vpop.f32.mrf.mxu1  ;;  %v2721_v38 = vpop.f32.mrf.mxu0 }
 0x262   :  { %v3335_v40 = vmul.f32 %v3130_v35, %v2887_v1  ;;  %v2720_v37 = vadd.f32 %v2719_v8, %v2431_v18 }
 0x263   :  { %v2435_v14 = vpop.f32.mrf.mxu1  ;;  %v2724_v42 = vpop.f32.mrf.mxu0 }
 0x264   :  { %v3398_v52 = vadd.f32 %v3397_v13, %v3335_v40  ;;  %v2888_v27 = vmax.f32 %v2720_v37, 0.0  ;;  %v2436_v34 = vadd.f32 %v2435_v14, %v5272_v20 }
 0x265   :  { %v2437_v7 = vpop.f32.mrf.mxu1  ;;  %v2726_v41 = vpop.f32.mrf.mxu0 }
 0x266   :  { %v3336_v11 = vmul.f32 %v3135_v3, %v2888_v27  ;;  %v2725_v61 = vadd.f32 %v2724_v42, %v2436_v34 }
 0x267   :  { %v2438_v36 = vpop.f32.mrf.mxu1  ;;  %v2727_v63 = vpop.f32.mrf.mxu0 }
 0x268   :  { %v3399_v9 = vadd.f32 %v3398_v52, %v3336_v11  ;;  %v2889_v19 = vmax.f32 %v2725_v61, 0.0  ;;  %v2439_v26 = vadd.f32 %v2438_v36, %v5274_v53 }
 0x269   :  { %v2440_v17 = vpop.f32.mrf.mxu1  ;;  %v2729_v49 = vpop.f32.mrf.mxu0 }
 0x26a   :  { %v3337_v55 = vmul.f32 %v3140_v51, %v2889_v19  ;;  %v2728_v5 = vadd.f32 %v2727_v63, %v2439_v26 }
 0x26b   :  { %v2443_v33 = vpop.f32.mrf.mxu1  ;;  %v2732_v47 = vpop.f32.mrf.mxu0 }
 0x26c   :  { %v3400_v62 = vadd.f32 %v3399_v9, %v3337_v55  ;;  %v2890_v20 = vmax.f32 %v2728_v5, 0.0  ;;  %v2444_v56 = vadd.f32 %v2443_v33, %v5288_v31  ;;  %v3155_v55 = vpop.permute.xlu1 %3154 }
 0x26d   :  { %v2445_v28 = vpop.f32.mrf.mxu1  ;;  %v2734_v0 = vpop.f32.mrf.mxu0 }
 0x26e   :  { %v3338_v57 = vmul.f32 %v3145_v54, %v2890_v20  ;;  %v2733_v12 = vadd.f32 %v2732_v47, %v2444_v56  ;;  %v3160_v47 = vpop.permute.xlu0 %3159 }
 0x26f   :  { %v2446_v23 = vpop.f32.mrf.mxu1  ;;  %v5595_v39 = vpop.f32.mrf.mxu0 }
 0x270   :  { %v3401_v53 = vadd.f32 %v3400_v62, %v3338_v57  ;;  %v2891_v45 = vmax.f32 %v2733_v12, 0.0  ;;  %v3165_v28 = vpop.permute.xlu1 %3164 }
 0x271   :  { %v2448_v48 = vpop.f32.mrf.mxu1  ;;  %v2737_v44 = vpop.f32.mrf.mxu0 }
 0x272   :  { %v3339_v46 = vmul.f32 %v3150_v22, %v2891_v45  ;;  %v3170_v12 = vpop.permute.xlu0 %3169 }
 0x273   :  { %v2451_v6 = vpop.f32.mrf.mxu1  ;;  %v5597_v25 = vpop.f32.mrf.mxu0 }
 0x274   :  { %v5599_v10 = vadd.f32 %v3401_v53, %v3339_v46  ;;  %v3175_v44 = vpop.permute.xlu1 %3174 }
 0x275   :  { %v2453_v15 = vpop.f32.mrf.mxu1  ;;  %v2742_v31 = vpop.f32.mrf.mxu0 }
 0x276   :  { %v5639_v31 = vpop.permute.xlu0 %3179 }
 0x277   :  { %v2454_v16 = vpop.f32.mrf.mxu1  ;;  %v5601_v8 = vpop.f32.mrf.mxu0 }
 0x279   :  { %v2456_v35 = vpop.f32.mrf.mxu1  ;;  %v2745_v13 = vpop.f32.mrf.mxu0 }
 0x27a   :  { %v2447_v35 = vadd.f32 %v2446_v23, %v5290_v2 }
 0x27b   :  { %v2459_v1 = vpop.f32.mrf.mxu1  ;;  %v5603_v18 = vpop.f32.mrf.mxu0 }
 0x27c   :  { %v2460_v23 = vadd.f32 %v2459_v1, %v5308_v50 }
 0x27d   :  { %v2461_v21 = vpop.f32.mrf.mxu1  ;;  %v2750_v38 = vpop.f32.mrf.mxu0 }
 0x27e   :  { %v2452_v38 = vadd.f32 %v2451_v6, %v5298_v59 }
 0x27f   :  { %v2462_v40 = vpop.f32.mrf.mxu1  ;;  %v5605_v37 = vpop.f32.mrf.mxu0 }
 0x280   :  { %v2741_v2 = vadd.f32 %v5597_v25, %v2452_v38 }
 0x281   :  { %v2464_v14 = vpop.f32.mrf.mxu1  ;;  %v2753_v42 = vpop.f32.mrf.mxu0 }
 0x283   :  { %v5607_v3 = vpop.f32.mrf.mxu1  ;;  %v5609_v52 = vpop.f32.mrf.mxu0 }
 0x284   :  { %v2468_v1 = vadd.f32 %v5607_v3, %v5324_v32 }
 0x285   :  { %v2469_v27 = vpop.f32.mrf.mxu1  ;;  %v2758_v34 = vpop.f32.mrf.mxu0 }
 0x286   :  { %v5647_v27 = vpop.permute.xlu1 %3184  ;;  %v2736_v34 = vadd.f32 %v5595_v39, %v2447_v35 }
 0x287   :  { %v5611_v7 = vpop.f32.mrf.mxu1  ;;  %v5613_v41 = vpop.f32.mrf.mxu0 }
 0x288   :  { %v2892_v6 = vmax.f32 %v2736_v34, 0.0  ;;  %v2471_v35 = vadd.f32 %v5611_v7, %v5326_v60 }
 0x289   :  { %v2472_v11 = vpop.f32.mrf.mxu1  ;;  %v2761_v61 = vpop.f32.mrf.mxu0 }
 0x28a   :  { %v2455_v11 = vadd.f32 %v2454_v16, %v5306_v30  ;;  %v5661_v30 = vpop.permute.xlu1 %3194  ;;  %v2893_v16 = vmax.f32 %v2741_v2, 0.0  ;;  %v2760_v7 = vadd.f32 %v5613_v41, %v2471_v35 }
 0x28b   :  { %v5615_v36 = vpop.f32.mrf.mxu1  ;;  %v5617_v63 = vpop.f32.mrf.mxu0 }
 0x28c   :  { %v2476_v32 = vadd.f32 %v5615_v36, %v5340_v24 }
 0x28d   :  { %v2477_v51 = vpop.f32.mrf.mxu1  ;;  %v2766_v9 = vpop.f32.mrf.mxu0 }
 0x28e   :  { %v5651_v9 = vpop.permute.xlu0 %3189  ;;  %v5679_v34 = vpop.permute.xlu1 %3204 }
 0x28f   :  { %v5619_v19 = vpop.f32.mrf.mxu1  ;;  %v5621_v26 = vpop.f32.mrf.mxu0 }
 0x291   :  { %v2480_v17 = vpop.f32.mrf.mxu1  ;;  %v2769_v49 = vpop.f32.mrf.mxu0 }
 0x292   :  { %v2744_v49 = vadd.f32 %v5601_v8, %v2455_v11  ;;  %v5668_v50 = vpop.permute.xlu0 %3199  ;;  %v2757_v11 = vadd.f32 %v5609_v52, %v2468_v1  ;;  %v3215_v41 = vpop.permute.xlu1 %3214 }
 0x293   :  { %v5623_v5 = vpop.f32.mrf.mxu1  ;;  %v5625_v33 = vpop.f32.mrf.mxu0 }
 0x294   :  { %v2894_v8 = vmax.f32 %v2744_v49, 0.0  ;;  %v2897_v24 = vmax.f32 %v2757_v11, 0.0  ;;  %v2484_v36 = vadd.f32 %v5623_v5, %v5350_v43  ;;  %v5836_v5 = vld [vmem:[#allocation23_spill] sm:$0xff] }
 0x295   :  { %v2485_v54 = vpop.f32.mrf.mxu1  ;;  %v2774_v62 = vpop.f32.mrf.mxu0 }
 0x296   :  { %v2463_v54 = vadd.f32 %v2462_v40, %v5316_v4  ;;  %v3342_v3 = vmul.f32 %v3165_v28, %v2894_v8  ;;  %v5685_v60 = vpop.permute.xlu0 %3209  ;;  %v2773_v43 = vadd.f32 %v5625_v33, %v2484_v36  ;;  %v5840_v36 = vld [vmem:[#allocation27_spill] sm:$0xff] }
 0x297   :  { %v5627_v20 = vpop.f32.mrf.mxu1  ;;  %v5629_v56 = vpop.f32.mrf.mxu0 }
 0x298   :  { %v2752_v4 = vadd.f32 %v5605_v37, %v2463_v54 }
 0x299   :  { %v2488_v0 = vpop.f32.mrf.mxu1  ;;  %v2777_v57 = vpop.f32.mrf.mxu0 }
 0x29a   :  { %v2749_v0 = vadd.f32 %v5603_v18, %v2460_v23  ;;  %v3220_v1 = vpop.permute.xlu0 %3219 }
 0x29b   :  { %v5631_v22 = vpop.f32.mrf.mxu1  ;;  %v5633_v53 = vpop.f32.mrf.mxu0 }
 0x29c   :  { %v2895_v18 = vmax.f32 %v2749_v0, 0.0 }
 0x29d   :  { %v2493_v45 = vpop.f32.mrf.mxu1  ;;  %v2782_v48 = vpop.f32.mrf.mxu0 }
 0x29e   :  { %v3340_v45 = vmul.f32 %v3155_v55, %v2892_v6  ;;  %v2896_v55 = vmax.f32 %v2752_v4, 0.0  ;;  %v3343_v23 = vmul.f32 %v3170_v12, %v2895_v18 }
 0x29f   :  { %v5635_v46 = vpop.f32.mrf.mxu1  ;;  %v5637_v15 = vpop.f32.mrf.mxu0 }
 0x2a0   :  { %v3403_v37 = vadd.f32 %v5599_v10, %v3340_v45  ;;  %v2765_v10 = vadd.f32 %v5617_v63, %v2476_v32  ;;  %v3344_v49 = vmul.f32 %v3175_v44, %v2896_v55  ;;  %v3345_v63 = vmul.f32 %v5639_v31, %v2897_v24  ;;  %v3225_v31 = vpop.permute.xlu1 %3224 }
 0x2a1   :  { %v2496_v13 = vpop.f32.mrf.mxu1  ;;  %v2785_v21 = vpop.f32.mrf.mxu0  ;;  %v2492_v44 = vadd.f32 %v5631_v22, %v5836_v5  ;;  %v2901_v32 = vmax.f32 %v2773_v43, 0.0  ;;  %v5842_v5 = vld [vmem:[#allocation24_spill] sm:$0xff] }
 0x2a2   :  { %v3341_v13 = vmul.f32 %v3160_v47, %v2893_v16  ;;  %v2479_v47 = vadd.f32 %v5619_v19, %v5342_v58  ;;  %v2487_v19 = vadd.f32 %v5627_v20, %v5358_v29  ;;  %v2899_v45 = vmax.f32 %v2765_v10, 0.0  ;;  %v5837_v20 = vld [vmem:[#allocation4_spill] sm:$0xff] }
 0x2a3   :  { %v5643_v14 = vpop.f32.mrf.mxu1  ;;  %v5645_v42 = vpop.f32.mrf.mxu0  ;;  %v2495_v35 = vadd.f32 %v5635_v46, %v5837_v20  ;;  %v2781_v22 = vadd.f32 %v5633_v53, %v2492_v44  ;;  %v3349_v53 = vmul.f32 %v5668_v50, %v2901_v32  ;;  %v5844_v32 = vld [vmem:[#allocation25_spill] sm:$0xff] }
 0x2a4   :  { %v3404_v2 = vadd.f32 %v3403_v37, %v3341_v13  ;;  %v2768_v58 = vadd.f32 %v5621_v26, %v2479_v47  ;;  %v2776_v29 = vadd.f32 %v5629_v56, %v2487_v19  ;;  %v3347_v33 = vmul.f32 %v5651_v9, %v2899_v45  ;;  %v5838_v37 = vld [vmem:[#allocation26_spill] sm:$0xff]  ;;  %v5839_v47 = vld [vmem:[#allocation21_spill] sm:$0xff] }
 0x2a5   :  { %v2501_v61 = vpop.f32.mrf.mxu1  ;;  %v2790_v51 = vpop.f32.mrf.mxu0  ;;  %v2903_v10 = vmax.f32 %v2781_v22, 0.0 }
 0x2a6   :  { %v3405_v28 = vadd.f32 %v3404_v2, %v3342_v3  ;;  %v2500_v3 = vadd.f32 %v5643_v14, %v5838_v37  ;;  %v2902_v46 = vmax.f32 %v2776_v29, 0.0 }
 0x2a7   :  { %v5655_v17 = vpop.f32.mrf.mxu1  ;;  %v5657_v59 = vpop.f32.mrf.mxu0 }
 0x2a8   :  { %v3406_v12 = vadd.f32 %v3405_v28, %v3343_v23  ;;  %v2503_v2 = vadd.f32 %v5655_v17, %v5839_v47  ;;  %v2789_v14 = vadd.f32 %v5645_v42, %v2500_v3  ;;  %v3351_v42 = vmul.f32 %v5685_v60, %v2903_v10 }
 0x2a9   :  { %v2504_v39 = vpop.f32.mrf.mxu1  ;;  %v2793_v62 = vpop.f32.mrf.mxu0 }
 0x2aa   :  { %v2898_v62 = vmax.f32 %v2760_v7, 0.0  ;;  %v3407_v8 = vadd.f32 %v3406_v12, %v3344_v49  ;;  %v2784_v7 = vadd.f32 %v5637_v15, %v2495_v35  ;;  %v3350_v15 = vmul.f32 %v5679_v34, %v2902_v46 }
 0x2ab   :  { %v5664_v57 = vpop.f32.mrf.mxu1  ;;  %v5666_v25 = vpop.f32.mrf.mxu0  ;;  %v2792_v17 = vadd.f32 %v5657_v59, %v2503_v2  ;;  %v2905_v43 = vmax.f32 %v2789_v14, 0.0 }
 0x2ac   :  { %v3346_v26 = vmul.f32 %v5647_v27, %v2898_v62  ;;  %v3408_v11 = vadd.f32 %v3407_v8, %v3345_v63  ;;  %v2508_v28 = vadd.f32 %v5664_v57, %v5840_v36  ;;  %v2904_v62 = vmax.f32 %v2784_v7, 0.0 }
 0x2ad   :  { %v2509_v40 = vpop.f32.mrf.mxu1  ;;  %v2798_v48 = vpop.f32.mrf.mxu0  ;;  %v2906_v59 = vmax.f32 %v2792_v17, 0.0  ;;  %v3353_v60 = vmul.f32 %v3220_v1, %v2905_v43 }
 0x2ae   :  { %v2900_v48 = vmax.f32 %v2768_v58, 0.0  ;;  %v3409_v56 = vadd.f32 %v3408_v11, %v3346_v26  ;;  %v5841_v58 = vld [vmem:[#allocation3_spill] sm:$0xff]  ;;  %v2797_v57 = vadd.f32 %v5666_v25, %v2508_v28 }
 0x2af   :  { %v5675_v21 = vpop.f32.mrf.mxu1  ;;  %v5677_v38 = vpop.f32.mrf.mxu0 }
 0x2b0   :  { %v3410_v24 = vadd.f32 %v3409_v56, %v3347_v33  ;;  %v2511_v19 = vadd.f32 %v5675_v21, %v5841_v58  ;;  %v5843_v21 = vld [vmem:[#allocation22_spill] sm:$0xff]  ;;  %v2907_v33 = vmax.f32 %v2797_v57, 0.0  ;;  %v5845_v56 = vld [vmem:[#allocation20_spill] sm:$0xff] }
 0x2b1   :  { %v2512_v61 = vpop.f32.mrf.mxu1  ;;  %v2801_v51 = vpop.f32.mrf.mxu0 }
 0x2b2   :  { %v3230_v61 = vpop.permute.xlu0 %3229  ;;  %v3348_v51 = vmul.f32 %v5661_v30, %v2900_v48  ;;  %v3235_v30 = vpop.permute.xlu1 %3234  ;;  %v2800_v26 = vadd.f32 %v5677_v38, %v2511_v19  ;;  %v5848_v19 = vld [vmem:[#allocation17_spill] sm:$0xff] }
 0x2b3   :  { %v5690_v6 = vpop.f32.mrf.mxu1  ;;  %v5692_v52 = vpop.f32.mrf.mxu0  ;;  %v3355_v47 = vmul.f32 %v3230_v61, %v2907_v33 }
 0x2b4   :  { %v2516_v44 = vadd.f32 %v5690_v6, %v5842_v5 }
 0x2b5   :  { %v2517_v54 = vpop.f32.mrf.mxu1  ;;  %v2806_v39 = vpop.f32.mrf.mxu0 }
 0x2b6   :  { %v3411_v39 = vadd.f32 %v3410_v24, %v3348_v51  ;;  %v3240_v63 = vpop.permute.xlu0 %3239  ;;  %v3245_v35 = vpop.permute.xlu1 %3244  ;;  %v2805_v25 = vadd.f32 %v5692_v52, %v2516_v44  ;;  %v5849_v44 = vld [vmem:[#allocation15_spill] sm:$0xff] }
 0x2b7   :  { %v2518_v16 = vpop.f32.mrf.mxu1  ;;  %v5700_v0 = vpop.f32.mrf.mxu0 }
 0x2b8   :  { %v3412_v45 = vadd.f32 %v3411_v39, %v3349_v53  ;;  %v2519_v48 = vadd.f32 %v2518_v16, %v5843_v21  ;;  %v2909_v1 = vmax.f32 %v2805_v25, 0.0  ;;  %v5846_v53 = vld [vmem:[#allocation19_spill] sm:$0xff] }
 0x2b9   :  { %v2520_v4 = vpop.f32.mrf.mxu1  ;;  %v2809_v40 = vpop.f32.mrf.mxu0 }
 0x2ba   :  { %v3413_v4 = vadd.f32 %v3412_v45, %v3350_v15  ;;  %v3352_v40 = vmul.f32 %v3215_v41, %v2904_v62  ;;  %v3250_v3 = vpop.permute.xlu0 %3249  ;;  %v3354_v41 = vmul.f32 %v3225_v31, %v2906_v59  ;;  %v2808_v38 = vadd.f32 %v5700_v0, %v2519_v48  ;;  %v5850_v48 = vld [vmem:[#allocation16_spill] sm:$0xff] }
 0x2bb   :  { %v2523_v13 = vpop.f32.mrf.mxu1  ;;  %v5710_v18 = vpop.f32.mrf.mxu0  ;;  %v3357_v62 = vmul.f32 %v3240_v63, %v2909_v1  ;;  %v5852_v1 = vld [vmem:[#allocation14_spill] sm:$0xff] }
 0x2bc   :  { %v3414_v11 = vadd.f32 %v3413_v4, %v3351_v42  ;;  %v2524_v22 = vadd.f32 %v2523_v13, %v5844_v32  ;;  %v3255_v13 = vpop.permute.xlu1 %3254  ;;  %v2910_v31 = vmax.f32 %v2808_v38, 0.0  ;;  %v5851_v32 = vld [vmem:[#allocation13_spill] sm:$0xff] }
 0x2bd   :  { %v2525_v27 = vpop.f32.mrf.mxu1  ;;  %v2814_v55 = vpop.f32.mrf.mxu0 }
 0x2be   :  { %v3415_v27 = vadd.f32 %v3414_v11, %v3352_v40  ;;  %v2908_v55 = vmax.f32 %v2800_v26, 0.0  ;;  %v2813_v2 = vadd.f32 %v5710_v18, %v2524_v22  ;;  %v3358_v43 = vmul.f32 %v3245_v35, %v2910_v31 }
 0x2bf   :  { %v2526_v23 = vpop.f32.mrf.mxu1  ;;  %v2815_v9 = vpop.f32.mrf.mxu0 }
 0x2c0   :  { %v2527_v16 = vadd.f32 %v2526_v23, %v5845_v56  ;;  %v3416_v7 = vadd.f32 %v3415_v27, %v3353_v60  ;;  %v3356_v36 = vmul.f32 %v3235_v30, %v2908_v55  ;;  %v5847_v23 = vld [vmem:[#allocation18_spill] sm:$0xff]  ;;  %v2911_v61 = vmax.f32 %v2813_v2, 0.0  ;;  %v3265_v5 = vpop.permute.xlu1 %3264 }
 0x2c1   :  { %v2528_v49 = vpop.f32.mrf.mxu1  ;;  %v2817_v54 = vpop.f32.mrf.mxu0 }
 0x2c2   :  { %v3417_v14 = vadd.f32 %v3416_v7, %v3354_v41  ;;  %v2816_v28 = vadd.f32 %v2815_v9, %v2527_v16  ;;  %v3260_v54 = vpop.permute.xlu0 %3259  ;;  %v3359_v4 = vmul.f32 %v3250_v3, %v2911_v61 }
 0x2c3   :  { %v2531_v12 = vpop.f32.mrf.mxu1  ;;  %v2820_v50 = vpop.f32.mrf.mxu0 }
 0x2c4   :  { %v2532_v10 = vadd.f32 %v2531_v12, %v5846_v53  ;;  %v3418_v15 = vadd.f32 %v3417_v14, %v3355_v47  ;;  %v2912_v12 = vmax.f32 %v2816_v28, 0.0  ;;  %v3275_v27 = vpop.permute.xlu1 %3274 }
 0x2c5   :  { %v2533_v8 = vpop.f32.mrf.mxu1  ;;  %v2822_v34 = vpop.f32.mrf.mxu0 }
 0x2c6   :  { %v2821_v18 = vadd.f32 %v2820_v50, %v2532_v10  ;;  %v3419_v42 = vadd.f32 %v3418_v15, %v3356_v36  ;;  %v3270_v63 = vpop.permute.xlu0 %3269  ;;  %v3360_v11 = vmul.f32 %v3255_v13, %v2912_v12 }
 0x2c7   :  { %v2534_v29 = vpop.f32.mrf.mxu1  ;;  %v2823_v20 = vpop.f32.mrf.mxu0 }
 0x2c8   :  { %v2535_v39 = vadd.f32 %v2534_v29, %v5847_v23  ;;  %v3420_v34 = vadd.f32 %v3419_v42, %v3357_v62  ;;  %v2913_v26 = vmax.f32 %v2821_v18, 0.0  ;;  %v3285_v28 = vpop.permute.xlu1 %3284  ;;  %v5853_v23 = vld [vmem:[#allocation11_spill] sm:$0xff] }
 0x2c9   :  { %v2536_v6 = vpop.f32.mrf.mxu1  ;;  %v2825_v37 = vpop.f32.mrf.mxu0 }
 0x2ca   :  { %v2824_v9 = vadd.f32 %v2823_v20, %v2535_v39  ;;  %v3421_v29 = vadd.f32 %v3420_v34, %v3358_v43  ;;  %v3361_v3 = vmul.f32 %v3260_v54, %v2913_v26 }
 0x2cb   :  { %v2539_v51 = vpop.f32.mrf.mxu1  ;;  %v2828_v46 = vpop.f32.mrf.mxu0 }
 0x2cc   :  { %v2540_v45 = vadd.f32 %v2539_v51, %v5848_v19  ;;  %v2914_v33 = vmax.f32 %v2824_v9, 0.0  ;;  %v3422_v20 = vadd.f32 %v3421_v29, %v3359_v4  ;;  %v3280_v51 = vpop.permute.xlu0 %3279  ;;  %v5855_v29 = vld [vmem:[#allocation9_spill] sm:$0xff] }
 0x2cd   :  { %v2541_v52 = vpop.f32.mrf.mxu1  ;;  %v2830_v24 = vpop.f32.mrf.mxu0 }
 0x2ce   :  { %v2829_v21 = vadd.f32 %v2828_v46, %v2540_v45  ;;  %v3423_v38 = vadd.f32 %v3422_v20, %v3360_v11  ;;  %v3362_v46 = vmul.f32 %v3265_v5, %v2914_v33 }
 0x2cf   :  { %v2542_v49 = vpop.f32.mrf.mxu1  ;;  %v2831_v0 = vpop.f32.mrf.mxu0 }
 0x2d0   :  { %v2543_v8 = vadd.f32 %v2542_v49, %v5849_v44  ;;  %v2915_v41 = vmax.f32 %v2829_v21, 0.0  ;;  %v3424_v13 = vadd.f32 %v3423_v38, %v3361_v3  ;;  %v3290_v61 = vpop.permute.xlu0 %3289 }
 0x2d1   :  { %v2544_v17 = vpop.f32.mrf.mxu1  ;;  %v2833_v58 = vpop.f32.mrf.mxu0 }
 0x2d2   :  { %v2832_v25 = vadd.f32 %v2831_v0, %v2543_v8  ;;  %v3363_v53 = vmul.f32 %v3270_v63, %v2915_v41  ;;  %v3425_v49 = vadd.f32 %v3424_v13, %v3362_v46  ;;  %v3295_v8 = vpop.permute.xlu1 %3294 }
 0x2d3   :  { %v2547_v57 = vpop.f32.mrf.mxu1  ;;  %v2836_v30 = vpop.f32.mrf.mxu0 }
 0x2d4   :  { %v2548_v50 = vadd.f32 %v2547_v57, %v5850_v48  ;;  %v2916_v7 = vmax.f32 %v2832_v25, 0.0  ;;  %v3426_v17 = vadd.f32 %v3425_v49, %v3363_v53  ;;  %v3300_v26 = vpop.permute.xlu0 %3299 }
 0x2d5   :  { %v2549_v40 = vpop.f32.mrf.mxu1  ;;  %v2838_v59 = vpop.f32.mrf.mxu0 }
 0x2d6   :  { %v2837_v55 = vadd.f32 %v2836_v30, %v2548_v50  ;;  %v3364_v0 = vmul.f32 %v3275_v27, %v2916_v7  ;;  %v5854_v30 = vld [vmem:[#allocation12_spill] sm:$0xff] }
 0x2d7   :  { %v2550_v60 = vpop.f32.mrf.mxu1  ;;  %v2839_v35 = vpop.f32.mrf.mxu0 }
 0x2d8   :  { %v2551_v22 = vadd.f32 %v2550_v60, %v5851_v32  ;;  %v2917_v10 = vmax.f32 %v2837_v55, 0.0  ;;  %v3427_v43 = vadd.f32 %v3426_v17, %v3364_v0 }
 0x2d9   :  { %v2552_v6 = vpop.f32.mrf.mxu1  ;;  %v2841_v37 = vpop.f32.mrf.mxu0 }
 0x2da   :  { %v2840_v47 = vadd.f32 %v2839_v35, %v2551_v22  ;;  %v3365_v58 = vmul.f32 %v3280_v51, %v2917_v10  ;;  %v3305_v6 = vpop.permute.xlu1 %3304  ;;  %v3441_v51 = vstv %s5761_s6 }
 0x2db   :  { %v2555_v56 = vpop.f32.mrf.mxu1  ;;  %v2844_v16 = vpop.f32.mrf.mxu0 }
 0x2dc   :  { %v2556_v2 = vadd.f32 %v2555_v56, %v5852_v1  ;;  %v2918_v54 = vmax.f32 %v2840_v47, 0.0  ;;  %v3428_v34 = vadd.f32 %v3427_v43, %v3365_v58 }
 0x2dd   :  { %v2557_v52 = vpop.f32.mrf.mxu1  ;;  %v2846_v24 = vpop.f32.mrf.mxu0 }
 0x2de   :  { %v2845_v14 = vadd.f32 %v2844_v16, %v2556_v2  ;;  %v3366_v12 = vmul.f32 %v3285_v28, %v2918_v54 }
 0x2df   :  { %v2558_v36 = vpop.f32.mrf.mxu1  ;;  %v2847_v31 = vpop.f32.mrf.mxu0 }
 0x2e0   :  { %v2559_v39 = vadd.f32 %v2558_v36, %v5853_v23  ;;  %v2919_v18 = vmax.f32 %v2845_v14, 0.0  ;;  %v3429_v21 = vadd.f32 %v3428_v34, %v3366_v12 }
 0x2e1   :  { %v2560_v15 = vpop.f32.mrf.mxu1  ;;  %v2849_v62 = vpop.f32.mrf.mxu0 }
 0x2e2   :  { %v2848_v19 = vadd.f32 %v2847_v31, %v2559_v39  ;;  %v3367_v4 = vmul.f32 %v3290_v61, %v2919_v18 }
 0x2e3   :  { %v2563_v45 = vpop.f32.mrf.mxu1  ;;  %v2852_v42 = vpop.f32.mrf.mxu0 }
 0x2e4   :  { %v2920_v57 = vmax.f32 %v2848_v19, 0.0  ;;  %v2564_v5 = vadd.f32 %v2563_v45, %v5854_v30  ;;  %v3430_v33 = vadd.f32 %v3429_v21, %v3367_v4 }
 0x2e5   :  { %v2565_v9 = vpop.f32.mrf.mxu1  ;;  %v2854_v44 = vpop.f32.mrf.mxu0 }
 0x2e6   :  { %v2853_v40 = vadd.f32 %v2852_v42, %v2564_v5  ;;  %v3368_v48 = vmul.f32 %v3295_v8, %v2920_v57 }
 0x2e7   :  { %v2566_v59 = vpop.f32.mrf.mxu1  ;;  %v2855_v63 = vpop.f32.mrf.mxu0 }
 0x2e8   :  { %v2921_v50 = vmax.f32 %v2853_v40, 0.0  ;;  %v2567_v11 = vadd.f32 %v2566_v59, %v5855_v29  ;;  %v3431_v22 = vadd.f32 %v3430_v33, %v3368_v48 }
 0x2e9   :  { %v2568_v60 = vpop.f32.mrf.mxu1  ;;  %v2857_v35 = vpop.f32.mrf.mxu0 }
 0x2ea   :  { %v3369_v25 = vmul.f32 %v3300_v26, %v2921_v50  ;;  %v2856_v32 = vadd.f32 %v2855_v63, %v2567_v11 }
 0x2ec   :  { %v2922_v20 = vmax.f32 %v2856_v32, 0.0  ;;  %v3432_v37 = vadd.f32 %v3431_v22, %v3369_v25 }
 0x2ee   :  { %v3370_v27 = vmul.f32 %v3305_v6, %v2922_v20 }
 0x2f0   :  { %v3433_v3 = vadd.f32 %v3432_v37, %v3370_v27 }
 0x2f2   :  { %v3434_v41 = vrot.slane %v3433_v3, 4 }
 0x2f4   :  { %v3435_v55 = vadd.f32 %v3434_v41, %v3433_v3 }
 0x2f6   :  { %v3436_v38 = vrot.slane %v3435_v55, 2 }
 0x2f8   :  { %v3437_v56 = vadd.f32 %v3436_v38, %v3435_v55 }
 0x2fa   :  { %v3438_v16 = vrot.slane %v3437_v56, 1 }
 0x2fc   :  { %v3439_v46 = vadd.f32 %v3438_v16, %v3437_v56 }
 0x2fe   :  { %v3442_v7 = vadd.f32 %v3441_v51, %v3439_v46 }
 0x300   :  { %v3647_v47 = vmul.f32 -1.442695, %v3442_v7 }
 0x302   :  { %3979 = vpow2.f32 %v3647_v47 }
 0x30f   :  { %v3980_v1 = vpop.eup %3979 }
 0x310   :  { %v3446_v2 = vadd.f32 1.0, %v3980_v1 }
 0x312   :  { %3981 = vrcp.f32 %v3446_v2 }
 0x31f   :  { %v3982_v52 = vpop.eup %3981 }
 0x320   :  { %3449 = vst [vmem:[%s5762_s7] sm:$0x1] %v3982_v52 }

</bundles_post_ra>
